<compile_context>
chip_gen: v6e
topology: v6e:2x2x1
jax: 0.10.0
libtpu: 0.0.40
codegen_flags: <defaults>
</compile_context>

<pallas_src>
import jax
import jax.numpy as jnp
import numpy as np
from jax.experimental import pallas as pl
from jax.experimental.pallas import tpu as pltpu


# ----------------------------------------------------------------------------
# String parsing (identical semantics to Augmentor.split_string)
# ----------------------------------------------------------------------------
def split_string(augments: str):
    parts = augments.split('-')
    typ = parts[0]
    params = []
    for p in parts[1:]:
        params.append(float(p) if '.' in p else int(p))
    return typ, params


# ----------------------------------------------------------------------------
# Generation-aware tiling helpers
# ----------------------------------------------------------------------------
def _block_budget_bytes() -> int:
    """Per-block budget (input block; output block is symmetric).

    With default double buffering a pallas_call holds ~2*in + 2*out blocks, so
    4 MiB blocks cost ~16 MiB, which is exactly v5e's *default* scoped-VMEM
    limit -- we therefore also raise vmem_limit_bytes to 32 MiB explicitly
    (safe everywhere: physical VMEM is 128/128/64 MiB on v5e/v6e/v7x)."""
    try:
        cap = getattr(pltpu.get_tpu_info(), "vmem_capacity_bytes", 64 << 20)
    except Exception:
        cap = 64 << 20                      # conservative (v7x per-TC VMEM)
    return int(max(512 << 10, min(4 << 20, cap // 32)))


def _compiler_params():
    return pltpu.CompilerParams(
        dimension_semantics=("parallel",),
        vmem_limit_bytes=32 << 20,
    )


def _leading_block(n: int, unit_bytes: int, budget: int, *,
                   align: int = 1, prefer_min_steps: int = 2) -> int:
    """Largest divisor of n (multiple of `align`, or n itself) whose block fits
    `budget`; prefer >= 2 grid steps on non-tiny arrays so v7x's two
    TensorCores both get work."""
    cands = [d for d in range(1, n + 1)
             if n % d == 0 and (align == 1 or d % align == 0 or d == n)]
    fitting = [d for d in cands if d * unit_bytes <= budget]
    best = max(fitting) if fitting else min(cands)
    if n // best < prefer_min_steps and n * unit_bytes > (512 << 10):
        alt = [d for d in fitting if n // d >= prefer_min_steps]
        if alt:
            best = max(alt)
    return best


# ----------------------------------------------------------------------------
# Gaussian blur (torchvision.transforms.GaussianBlur(kernel_size, sigma))
# reflect padding + separable conv baked into banded matrices -> MXU matmuls
# ----------------------------------------------------------------------------
def _gaussian_kernel_1d(kernel_size: int, sigma: float) -> np.ndarray:
    # matches torchvision _get_gaussian_kernel1d
    half = (kernel_size - 1) * 0.5
    x = np.linspace(-half, half, kernel_size)
    pdf = np.exp(-0.5 * (x / sigma) ** 2)
    return pdf / pdf.sum()


def _reflect_index(j: int, n: int) -> int:
    # torchvision / np.pad 'reflect' (no edge repeat)
    if n == 1:
        return 0
    period = 2 * (n - 1)
    j = j % period
    return period - j if j >= n else j


def _reflect_band_matrix(n: int, taps: np.ndarray, r: int) -> np.ndarray:
    """B such that (B @ x) == reflect-padded 1D conv of x with `taps`."""
    B = np.zeros((n, n), np.float64)
    for i in range(n):
        for t, w in enumerate(taps):
            B[i, _reflect_index(i - r + t, n)] += w
    return B


def _blur_matmul_kernel(x_ref, m_ref, o_ref):
    # x: (P, H*W) flattened planes, m: (H*W, H*W) = kron(Bh, Bw)^T.
    # One lane-dense MXU matmul does the whole reflect-padded 2D blur.
    x = x_ref[...].astype(jnp.float32)
    o_ref[...] = jnp.dot(
        x, m_ref[...],
        preferred_element_type=jnp.float32,
        precision=jax.lax.Precision.HIGHEST,
    ).astype(o_ref.dtype)


def _blur_separable_kernel(x_ref, bh_ref, bwt_ref, o_ref):
    # Fallback for planes whose flattened size is not lane-friendly or too big
    # for the Kronecker operator: two banded MXU matmuls per plane (still no
    # concatenates / shifted-slice temporaries).
    x = x_ref[...].astype(jnp.float32)                       # (P, H, W)
    v = jnp.einsum('hk,pkw->phw', bh_ref[...], x,
                   preferred_element_type=jnp.float32,
                   precision=jax.lax.Precision.HIGHEST)
    o = jnp.einsum('phk,kw->phw', v, bwt_ref[...],
                   preferred_element_type=jnp.float32,
                   precision=jax.lax.Precision.HIGHEST)
    o_ref[...] = o.astype(o_ref.dtype)


_KRON_MAX_HW = 1024        # kron operator is (HW, HW) f32  ->  <= 4 MiB


def gaussian_blur(img, kernel_size: int, sigma: float):
    if kernel_size <= 0 or kernel_size % 2 == 0:
        raise ValueError("GaussianBlur kernel_size must be a positive odd int")
    N, C, H, W = img.shape
    n_planes, HW = N * C, H * W
    r = (kernel_size - 1) // 2
    taps = _gaussian_kernel_1d(kernel_size, float(sigma))
    bh = _reflect_band_matrix(H, taps, r)                    # (H, H)
    bw = _reflect_band_matrix(W, taps, r)                    # (W, W)
    budget = _block_budget_bytes()
    itemsize = img.dtype.itemsize

    if HW % 128 == 0 and HW <= _KRON_MAX_HW:
        # Hot path: fully lane-dense in/out blocks, single MXU matmul per block.
        m = jnp.asarray(np.kron(bh, bw).T, dtype=jnp.float32)   # (HW, HW)
        x2d = img.reshape(n_planes, HW)                          # free reshape
        P = _leading_block(n_planes, HW * itemsize, budget // 2, align=8)
        out = pl.pallas_call(
            _blur_matmul_kernel,
            out_shape=jax.ShapeDtypeStruct((n_planes, HW), img.dtype),
            grid=(n_planes // P,),
            in_specs=[pl.BlockSpec((P, HW), lambda i: (i, 0)),
                      pl.BlockSpec((HW, HW), lambda i: (0, 0))],
            out_specs=pl.BlockSpec((P, HW), lambda i: (i, 0)),
            compiler_params=_compiler_params(),
        )(x2d, m)
        return out.reshape(N, C, H, W)

    # Fallback: separable banded matmuls on whole (H, W) planes.
    # TODO(synk): planes too large for one VMEM block would need an H-strip
    #             grid axis with an r-row halo; not needed at target shapes.
    planes = img.reshape(n_planes, H, W)
    P = _leading_block(n_planes, HW * 4 * 3, budget)   # x + f32 temporaries
    out = pl.pallas_call(
        _blur_separable_kernel,
        out_shape=jax.ShapeDtypeStruct((n_planes, H, W), img.dtype),
        grid=(n_planes // P,),
        in_specs=[pl.BlockSpec((P, H, W), lambda i: (i, 0, 0)),
                  pl.BlockSpec((H, H), lambda i: (0, 0)),
                  pl.BlockSpec((W, W), lambda i: (0, 0))],
        out_specs=pl.BlockSpec((P, H, W), lambda i: (i, 0, 0)),
        compiler_params=_compiler_params(),
    )(planes,
      jnp.asarray(bh, dtype=jnp.float32),
      jnp.asarray(bw.T, dtype=jnp.float32))
    return out.reshape(N, C, H, W)


# ----------------------------------------------------------------------------
# Invert (torchvision RandomInvert with p=1 on float images: 1.0 - x)
# flattened lane-dense (rows, L) layout, L a multiple of 128, rows >= 8
# ----------------------------------------------------------------------------
def _invert_kernel(x_ref, o_ref):
    x = x_ref[...]
    if x.dtype in (jnp.bfloat16, jnp.float32):
        # native-dtype compute (bf16 VALU on v6e/v7x halves vreg traffic)
        o_ref[...] = (jnp.asarray(1.0, dtype=x.dtype) - x).astype(o_ref.dtype)
    else:
        o_ref[...] = (1.0 - x.astype(jnp.float32)).astype(o_ref.dtype)


def invert(img):
    shape = img.shape
    total = int(np.prod(shape))
    itemsize = img.dtype.itemsize
    budget = _block_budget_bytes()

    flat = img.reshape(-1)
    padded = -(-total // 128) * 128
    if padded != total:
        # pad the tail so the lane-dense tiled path is always taken
        flat = jnp.pad(flat, (0, padded - total))

    # widest lane dim (multiple of 128) that still leaves >= 8 sublane rows
    L = None
    for cand in (2048, 1024, 512, 256, 128):
        if padded % cand == 0 and padded // cand >= 8:
            L = cand
            break
    if L is None:
        for cand in (2048, 1024, 512, 256, 128):
            if padded % cand == 0:
                L = cand
                break
    rows = padded // L
    x2d = flat.reshape(rows, L)

    br = _leading_block(rows, L * itemsize, budget, align=8)
    out = pl.pallas_call(
        _invert_kernel,
        out_shape=jax.ShapeDtypeStruct((rows, L), img.dtype),
        grid=(rows // br,),
        in_specs=[pl.BlockSpec((br, L), lambda i: (i, 0))],
        out_specs=pl.BlockSpec((br, L), lambda i: (i, 0)),
        compiler_params=_compiler_params(),
    )(x2d)
    out = out.reshape(-1)
    if padded != total:
        out = out[:total]
    return out.reshape(shape)


# ----------------------------------------------------------------------------
# Autocontrast (torchvision RandomAutocontrast with p=1, float images, bound=1)
# lane-dense (planes, H*W/128, 128) view; per-plane min/max + rescale
# ----------------------------------------------------------------------------
def _autocontrast_kernel(x_ref, o_ref):
    x = x_ref[...].astype(jnp.float32)                     # (P, d1, d2)
    mn = jnp.min(x, axis=(1, 2), keepdims=True)
    mx = jnp.max(x, axis=(1, 2), keepdims=True)
    nd = mx > mn                                           # non-degenerate
    d = jnp.where(nd, mx - mn, 1.0)
    inv = pl.reciprocal(d, approx=True)                    # EUP (otherwise idle)
    inv = inv * (2.0 - d * inv)                            # Newton step -> ~exact
    y = jnp.where(nd, (x - mn) * inv, x)
    o_ref[...] = jnp.clip(y, 0.0, 1.0).astype(o_ref.dtype)


def autocontrast(img):
    N, C, H, W = img.shape
    n_planes, HW = N * C, H * W
    budget = _block_budget_bytes()

    if HW % 128 == 0:
        view = img.reshape(n_planes, HW // 128, 128)       # lane-dense, free reshape
    else:
        # TODO(synk): odd plane sizes keep W on the lane axis (partially masked)
        view = img.reshape(n_planes, H, W)
    d1, d2 = view.shape[1], view.shape[2]

    P = _leading_block(n_planes, HW * img.dtype.itemsize, budget)
    out = pl.pallas_call(
        _autocontrast_kernel,
        out_shape=jax.ShapeDtypeStruct(view.shape, img.dtype),
        grid=(n_planes // P,),
        in_specs=[pl.BlockSpec((P, d1, d2), lambda i: (i, 0, 0))],
        out_specs=pl.BlockSpec((P, d1, d2), lambda i: (i, 0, 0)),
        compiler_params=_compiler_params(),
    )(view)
    return out.reshape(N, C, H, W)


# ----------------------------------------------------------------------------
# Augmentor.forward equivalent
# ----------------------------------------------------------------------------
def augmentor_forward(augments: str, img):
    typ, param = split_string(augments)
    if typ == 'gaublur':
        kernel_size = int(param[0])
        # TODO(synk): torchvision samples sigma ~ U(0.1, 2.0) when omitted;
        #             we require / default a deterministic sigma.
        sigma = float(param[1]) if len(param) > 1 else 1.0
        return gaussian_blur(img, kernel_size, sigma)
    if typ == 'invert':
        # TODO(synk): RandomInvert(p<1) is stochastic; implemented as p=1.
        return invert(img)
    if typ == 'contrast':
        # TODO(synk): RandomAutocontrast(p<1) is stochastic; implemented as p=1.
        return autocontrast(img)
    if typ == 'none':
        return img                      # Identity: input is the output
    raise NotImplementedError(f"augment '{typ}' has no Pallas implementation")


# ----------------------------------------------------------------------------
# Demo / smoke test
# ----------------------------------------------------------------------------
if __name__ == "__main__":
    key = jax.random.PRNGKey(0)
    N, C, H, W = 2, 4, 16, 16
    img = jax.random.uniform(key, (N, C, H, W), dtype=jnp.float32)  # in [0, 1]

    # --- GaussianBlur(3, 1.5): lane-dense Kronecker MXU path ---
    out_blur = jax.block_until_ready(augmentor_forward('gaublur-3-1.5', img))
    k1d = _gaussian_kernel_1d(3, 1.5)
    w2d = np.outer(k1d, k1d)
    planes = np.asarray(img, np.float64).reshape(N * C, H, W)
    padded = np.pad(planes, ((0, 0), (1, 1), (1, 1)), mode='reflect')
    ref = np.zeros_like(planes)
    for ky in range(3):
        for kx in range(3):
            ref += w2d[ky, kx] * padded[:, ky:ky + H, kx:kx + W]
    assert np.allclose(np.asarray(out_blur).reshape(N * C, H, W), ref,
                       atol=5e-4), "gaussian blur (kron path) mismatch"

    # --- GaussianBlur fallback path (H*W not a multiple of 128) ---
    img_s = jax.random.uniform(jax.random.PRNGKey(1), (1, 3, 12, 12),
                               dtype=jnp.float32)
    out_blur_s = jax.block_until_ready(gaussian_blur(img_s, 3, 1.5))
    planes_s = np.asarray(img_s, np.float64).reshape(3, 12, 12)
    padded_s = np.pad(planes_s, ((0, 0), (1, 1), (1, 1)), mode='reflect')
    ref_s = np.zeros_like(planes_s)
    for ky in range(3):
        for kx in range(3):
            ref_s += w2d[ky, kx] * padded_s[:, ky:ky + 12, kx:kx + 12]
    assert np.allclose(np.asarray(out_blur_s).reshape(3, 12, 12), ref_s,
                       atol=5e-4), "gaussian blur (separable path) mismatch"

    # --- Invert ---
    out_inv = jax.block_until_ready(augmentor_forward('invert-1', img))
    assert np.allclose(np.asarray(out_inv), 1.0 - np.asarray(img), atol=1e-6)
    # padded-tail path (element count not a multiple of 128)
    img_odd = jax.random.uniform(jax.random.PRNGKey(2), (3, 5, 7),
                                 dtype=jnp.float32)
    out_inv_odd = jax.block_until_ready(invert(img_odd))
    assert np.allclose(np.asarray(out_inv_odd), 1.0 - np.asarray(img_odd),
                       atol=1e-6)

    # --- Autocontrast ---
    out_ac = jax.block_until_ready(augmentor_forward('contrast-1', img))
    planes32 = np.asarray(img).reshape(N * C, H, W)
    pm = planes32.min(axis=(1, 2), keepdims=True)
    pM = planes32.max(axis=(1, 2), keepdims=True)
    ref_ac = np.clip((planes32 - pm) / np.where(pM == pm, 1.0, pM - pm),
                     0.0, 1.0)
    assert np.allclose(np.asarray(out_ac).reshape(N * C, H, W), ref_ac,
                       atol=1e-5), "autocontrast mismatch"

    # --- Identity ---
    out_id = jax.block_until_ready(augmentor_forward('none', img))
    assert np.allclose(np.asarray(out_id), np.asarray(img))

    print("KERNEL_OK")
</pallas_src>

<mosaic_0001>
module attributes {stable_mosaic.version = 11 : i64} {
  func.func @_blur_matmul_kernel(%arg0: i32, %arg1: memref<8x256xf32, #tpu.memory_space<vmem>>, %arg2: memref<256x256xf32, #tpu.memory_space<vmem>>, %arg3: memref<8x256xf32, #tpu.memory_space<vmem>>) attributes {dimension_semantics = [#tpu.dimension_semantics<parallel>], iteration_bounds = array<i64: 1>, scalar_prefetch = 0 : i64, scratch_operands = 0 : i64, tpu.core_type = #tpu.core_type<tc>, window_params = [{transform_indices = @transform_0, window_bounds = array<i64: 8, 256>}, {pipeline_mode = #tpu.pipeline_mode<synchronous>, transform_indices = @transform_1, window_bounds = array<i64: 256, 256>}, {transform_indices = @transform_2, window_bounds = array<i64: 8, 256>}]} {
    %c0 = arith.constant 0 : index
    %c0_0 = arith.constant 0 : index
    %0 = vector.load %arg1[%c0, %c0_0] : memref<8x256xf32, #tpu.memory_space<vmem>>, vector<8x256xf32>
    %c0_1 = arith.constant 0 : index
    %c0_2 = arith.constant 0 : index
    %1 = vector.load %arg2[%c0_1, %c0_2] : memref<256x256xf32, #tpu.memory_space<vmem>>, vector<256x256xf32>
    %cst = arith.constant dense<0.000000e+00> : vector<8x256xf32>
    %2 = tpu.matmul %0, %1, %cst {dimension_numbers = #tpu.dot_dimension_numbers<[1], [0], [0], [1], [0, 0, 1, 1], [], []>, precision = #tpu.contract_precision<fp32>} : vector<8x256xf32>, vector<256x256xf32>, vector<8x256xf32> -> vector<8x256xf32>
    %c0_3 = arith.constant 0 : index
    %c0_4 = arith.constant 0 : index
    %3 = vector.load %arg3[%c0_3, %c0_4] : memref<8x256xf32, #tpu.memory_space<vmem>>, vector<8x256xf32>
    tpu.vector_store %arg3[%c0_3, %c0_4], %2 {strides = array<i32>} : memref<8x256xf32, #tpu.memory_space<vmem>>, vector<8x256xf32>,
    return
  }
  func.func @transform_0(%arg0: i32) -> (i32, i32) {
    %c0_i32 = arith.constant 0 : i32
    %c0_i32_0 = arith.constant 0 : i32
    return %arg0, %c0_i32 : i32, i32
  }
  func.func @transform_1(%arg0: i32) -> (i32, i32) {
    %c0_i32 = arith.constant 0 : i32
    %c0_i32_0 = arith.constant 0 : i32
    %c0_i32_1 = arith.constant 0 : i32
    return %c0_i32, %c0_i32_0 : i32, i32
  }
  func.func @transform_2(%arg0: i32) -> (i32, i32) {
    %c0_i32 = arith.constant 0 : i32
    %c0_i32_0 = arith.constant 0 : i32
    return %arg0, %c0_i32 : i32, i32
  }
}

</mosaic_0001>

<bundles_post_ra>
// kernel: tpu_custom_call.1
= control target key start
LH: loop header
LB: loop body
LE: loop exit
PB: predicated region body
PF: predicated region fallthrough
CT: control target
= control target key end

     0   :  { %7 = vsyncpa [#allocation3], 0  ;;  %s2716_s0 = inlined_call_operand.hbm [shape: f32[8,256], index: 0, kind: input, shape index: {}]   ;;  %s2717_s1 = inlined_call_operand.hbm [shape: f32[256,256], index: 1, kind: input, shape index: {}]   ;;  %s2718_s2 = inlined_call_operand.hbm [shape: f32[8,256], index: 2, kind: output, shape index: {}]  }
   0x1   :  { %8 = vsyncpa [#allocation6], 0 }
   0x2   :  { %9 = vsyncpa [#allocation4], 0  ;;  %s1477_s9 = smov [#allocation2]   ;;  %s1478_s11 = smov [#allocation5]  }
   0x3   :  { %s16_s10 = sshll.u32 %s1477_s9, 4  ;;  %s25_s12 = sshll.u32 %s1478_s11, 4  ;;  %s17_s10 = int_to_ptr.vmem [resolvable:$true] %s16_s10  ;;  %s26_s12 = int_to_ptr.vmem [resolvable:$true] %s25_s12 }
   0x4   :  { %s1419_s13 = scalar_lea.vmem %s17_s10, 256  ;;  %p1424_p1 = scmp.lt.s32.totalorder %s17_s10, %s17_s10 }
   0x5   :  { %p1420_p0 = scmp.ne.s32.totalorder %s17_s10, %s1419_s13  ;;  %p1425_p2 = scmp.lt.s32.totalorder %s1419_s13, %s1419_s13 }
   0x7   :  { %p1426_p3 = por %p1425_p2, %p1424_p1 }
   0x9   :  { %p1427_p4 = pnand %p1426_p3, %p1420_p0 }
   0xb   :  { %1430 = shalt.err (!%p1427_p4)
}
   0xc   :  { %19 = dma.hbm_to_vmem [thread:$0]  %s2716_s0, 256, %s17_s10, [#allocation3]  }
   0xd   :  { %s1439_s16 = scalar_lea.vmem %s26_s12, 8192  ;;  %p1444_p6 = scmp.lt.s32.totalorder %s26_s12, %s26_s12 }
   0xe   :  { %p1440_p5 = scmp.ne.s32.totalorder %s26_s12, %s1439_s16  ;;  %p1445_p7 = scmp.lt.s32.totalorder %s1439_s16, %s1439_s16 }
  0x10   :  { %p1446_p8 = por %p1445_p7, %p1444_p6 }
  0x12   :  { %p1447_p9 = pnand %p1446_p8, %p1440_p5 }
  0x14   :  { %1450 = shalt.err (!%p1447_p9)
}
  0x15   :  { %s1479_s17 = smov 256   ;;  %s1480_s18 = smov 16  }
  0x16   :  { %31 = dma.hbm_to_vmem [thread:$0]  %s2717_s1, 8192, %s26_s12, [#allocation6], %s1479_s17, %s1479_s17, %s1480_s18  }
  0x17   :  { %1471 = dma.done.wait [#allocation3], 256  }
  0x18   :  { %1472 = vsyncadd [#allocation3], 4294967040 }
  0x19   :  { %1473 = dma.done.wait [#allocation6], 8192  }
  0x1a   :  { %1474 = vsyncadd [#allocation6], 4294959104  ;;  %v71_v0 = vld [vmem:[#allocation5 + $0xf8] sm:$0xff]  ;;  %v70_v1 = vld [vmem:[#allocation5 + $0xf0] sm:$0xff]  ;;  %s1481_s0 = smov [#allocation7]  }
  0x1b   :  { %v69_v2 = vld [vmem:[#allocation5 + $0xe8] sm:$0xff]  ;;  %v1503_v3 = vand.u32 4294901760, %v71_v0  ;;  %v1505_v4 = vand.u32 4294901760, %v70_v1  ;;  %v68_v6 = vld [vmem:[#allocation5 + $0xe0] sm:$0xff]  ;;  %v67_v7 = vld [vmem:[#allocation5 + $0xd8] sm:$0xff]  ;;  %s1396_s1 = sshll.u32 %s1481_s0, 4  ;;  %s1397_s1 = int_to_ptr.vmem [resolvable:$true] %s1396_s1 }
  0x1c   :  { %v1507_v5 = vand.u32 4294901760, %v69_v2  ;;  %v66_v8 = vld [vmem:[#allocation5 + $0xd0] sm:$0xff]  ;;  %v1509_v9 = vand.u32 4294901760, %v68_v6  ;;  %v1511_v10 = vand.u32 4294901760, %v67_v7  ;;  %v65_v12 = vld [vmem:[#allocation5 + $0xc8] sm:$0xff]  ;;  %v64_v13 = vld [vmem:[#allocation5 + $0xc0] sm:$0xff]  ;;  %p1456_p11 = scmp.lt.s32.totalorder %s1397_s1, %s1397_s1 }
  0x1d   :  { %v1513_v11 = vand.u32 4294901760, %v66_v8  ;;  %v63_v14 = vld [vmem:[#allocation5 + $0xb8] sm:$0xff]  ;;  %105 = vmatprep.subr.mxu0 %v1503_v3  ;;  %v1516_v15 = vand.u32 4294901760, %v65_v12  ;;  %v1518_v16 = vand.u32 4294901760, %v64_v13  ;;  %v1523_v18 = vsub.f32 %v71_v0, %v1503_v3  ;;  %v1525_v19 = vld [vmem:[#allocation5 + $0xb0] sm:$0xff]  ;;  %v1527_v20 = vld [vmem:[#allocation5 + $0xa8] sm:$0xff] }
  0x1e   :  { %v1520_v17 = vand.u32 4294901760, %v63_v14  ;;  %v1529_v21 = vld [vmem:[#allocation5 + $0xa0] sm:$0xff]  ;;  %107 = vmatpush1.msra.mxu0 %v1505_v4  ;;  %v1533_v22 = vand.u32 4294901760, %v1525_v19  ;;  %v1536_v23 = vsub.f32 %v70_v1, %v1505_v4  ;;  %v1539_v24 = vand.u32 4294901760, %v1527_v20  ;;  %v1544_v26 = vld [vmem:[#allocation5 + $0x98] sm:$0xff]  ;;  %v1546_v27 = vld [vmem:[#allocation5 + $0x90] sm:$0xff] }
  0x1f   :  { %v1542_v25 = vsub.f32 %v69_v2, %v1507_v5  ;;  %v1548_v28 = vld [vmem:[#allocation5 + $0x88] sm:$0xff]  ;;  %109 = vmatprep.subr.mxu0 %v1507_v5  ;;  %v2732_v29 = vand.u32 4294901760, %v1523_v18  ;;  %v1553_v30 = vand.u32 4294901760, %v1529_v21  ;;  %v1556_v31 = vsub.f32 %v68_v6, %v1509_v9  ;;  %v1570_v37 = vld [vmem:[#allocation5 + $0x80] sm:$0xff]  ;;  %v1594_v46 = vld [vmem:[#allocation5 + $0x78] sm:$0xff]  ;;  %s1451_s21 = scalar_lea.vmem %s1397_s1, 256 }
  0x20   :  { %2932 = vst [vmem:[#allocation11_spill] sm:$0xff] %v1539_v24  ;;  %v1559_v32 = vand.u32 4294901760, %v1544_v26  ;;  %111 = vmatpush1.msra.mxu0 %v1509_v9  ;;  %v2730_v33 = vand.u32 4294901760, %v1536_v23  ;;  %v1565_v35 = vsub.f32 %v67_v7, %v1511_v10  ;;  %v1568_v36 = vand.u32 4294901760, %v1546_v27  ;;  %v1604_v51 = vld [vmem:[#allocation5 + $0x70] sm:$0xff]  ;;  %v1611_v56 = vld [vmem:[#allocation5 + $0x68] sm:$0xff]  ;;  %p1452_p10 = scmp.ne.s32.totalorder %s1397_s1, %s1451_s21  ;;  %p1457_p12 = scmp.lt.s32.totalorder %s1451_s21, %s1451_s21 }
  0x21   :  { %2933 = vst [vmem:[#allocation12_spill] sm:$0xff] %v1553_v30  ;;  %v2729_v34 = vand.u32 4294901760, %v1542_v25  ;;  %113 = vmatprep.subr.mxu0 %v1511_v10  ;;  %v252_v38 = vsub.f32 %v1523_v18, %v2732_v29  ;;  %v2727_v39 = vand.u32 4294901760, %v1556_v31  ;;  %v1578_v40 = vsub.f32 %v66_v8, %v1513_v11  ;;  %v1623_v61 = vld [vmem:[#allocation5 + $0x60] sm:$0xff]  ;;  %v1635_v2 = vld [vmem:[#allocation5 + $0x58] sm:$0xff] }
  0x22   :  { %2934 = vst [vmem:[#allocation13_spill] sm:$0xff] %v1559_v32  ;;  %2935 = vst [vmem:[#allocation14_spill] sm:$0xff] %v1568_v36  ;;  %v1581_v41 = vand.u32 4294901760, %v1548_v28  ;;  %115 = vmatpush1.msra.mxu0 %v1513_v11  ;;  %v258_v42 = vsub.f32 %v1536_v23, %v2730_v33  ;;  %v2725_v44 = vand.u32 4294901760, %v1565_v35  ;;  %v1592_v45 = vsub.f32 %v65_v12, %v1516_v15  ;;  %p1458_p13 = por %p1457_p12, %p1456_p11 }
  0x23   :  { %v264_v43 = vsub.f32 %v1542_v25, %v2729_v34  ;;  %117 = vmatprep.subr.mxu0 %v1516_v15  ;;  %v253_v47 = vand.u32 4294901760, %v252_v38  ;;  %v270_v48 = vsub.f32 %v1556_v31, %v2727_v39  ;;  %v2724_v49 = vand.u32 4294901760, %v1578_v40  ;;  %v1726_v39 = vld [vmem:[#allocation5 + $0x28] sm:$0xff]  ;;  %v1736_v34 = vld [vmem:[#allocation5 + $0x20] sm:$0xff] }
  0x24   :  { %2936 = vst [vmem:[#allocation15_spill] sm:$0xff] %v1581_v41  ;;  %v1602_v50 = vand.u32 4294901760, %v1570_v37  ;;  %119 = vmatpush1.msra.mxu0 %v1518_v16  ;;  %v259_v52 = vand.u32 4294901760, %v258_v42  ;;  %v276_v54 = vsub.f32 %v1565_v35, %v2725_v44  ;;  %v2722_v55 = vand.u32 4294901760, %v1592_v45  ;;  %p1459_p0 = pnand %p1458_p13, %p1452_p10 }
  0x25   :  { %v265_v53 = vand.u32 4294901760, %v264_v43  ;;  %121 = vmatprep.subr.mxu0 %v1520_v17  ;;  %254 = vmatprep.subr.mxu1 %v253_v47  ;;  %v271_v57 = vand.u32 4294901760, %v270_v48  ;;  %v282_v58 = vsub.f32 %v1578_v40, %v2724_v49  ;;  %v1618_v59 = vsub.f32 %v64_v13, %v1518_v16  ;;  %v1646_v13 = vld [vmem:[#allocation5 + $0x50] sm:$0xff] }
  0x26   :  { %2937 = vst [vmem:[#allocation16_spill] sm:$0xff] %v1602_v50  ;;  %v1621_v60 = vand.u32 4294901760, %v1594_v46  ;;  %123 = vmatpush1.msra.mxu0 %v1533_v22  ;;  %260 = vmatpush1.msra.mxu1 %v259_v52  ;;  %v277_v62 = vand.u32 4294901760, %v276_v54  ;;  %v288_v63 = vsub.f32 %v1592_v45, %v2722_v55  ;;  %v1630_v0 = vsub.f32 %v63_v14, %v1520_v17  ;;  %v1713_v49 = vld [vmem:[#allocation5 + $0x30] sm:$0xff] }
  0x27   :  { %v1633_v1 = vand.u32 4294901760, %v1604_v51  ;;  %125 = vmatprep.subr.mxu0 %v1539_v24  ;;  %266 = vmatprep.subr.mxu1 %v265_v53  ;;  %v283_v6 = vand.u32 4294901760, %v282_v58  ;;  %v2720_v7 = vand.u32 4294901760, %v1618_v59  ;;  %v1641_v8 = vsub.f32 %v1525_v19, %v1533_v22 }
  0x28   :  { %2938 = vst [vmem:[#allocation17_spill] sm:$0xff] %v1621_v60  ;;  %v1644_v12 = vand.u32 4294901760, %v1611_v56  ;;  %127 = vmatpush1.msra.mxu0 %v1553_v30  ;;  %272 = vmatpush1.msra.mxu1 %v271_v57  ;;  %v289_v14 = vand.u32 4294901760, %v288_v63  ;;  %v2719_v38 = vand.u32 4294901760, %v1630_v0  ;;  %v1652_v42 = vsub.f32 %v1527_v20, %v1539_v24  ;;  %v1669_v20 = vld [vmem:[#allocation5 + $0x48] sm:$0xff] }
  0x29   :  { %2939 = vst [vmem:[#allocation18_spill] sm:$0xff] %v1633_v1  ;;  %v1655_v43 = vand.u32 4294901760, %v1623_v61  ;;  %129 = vmatprep.subr.mxu0 %v1559_v32  ;;  %278 = vmatprep.subr.mxu1 %v277_v62  ;;  %v294_v19 = vsub.f32 %v1618_v59, %v2720_v7  ;;  %v2721_v47 = vand.u32 4294901760, %v1641_v8  ;;  %v1664_v48 = vsub.f32 %v1529_v21, %v1553_v30 }
  0x2a   :  { %2940 = vst [vmem:[#allocation19_spill] sm:$0xff] %v1644_v12  ;;  %v1667_v52 = vand.u32 4294901760, %v1635_v2  ;;  %131 = vmatpush1.msra.mxu0 %v1568_v36  ;;  %284 = vmatpush1.msra.mxu1 %v283_v6  ;;  %v300_v53 = vsub.f32 %v1630_v0, %v2719_v38  ;;  %v2723_v54 = vand.u32 4294901760, %v1652_v42  ;;  %v1678_v57 = vsub.f32 %v1544_v26, %v1559_v32  ;;  %v1692_v38 = vld [vmem:[#allocation5 + $0x40] sm:$0xff] }
  0x2b   :  { %2941 = vst [vmem:[#allocation20_spill] sm:$0xff] %v1655_v43  ;;  %v1681_v21 = vand.u32 4294901760, %v1646_v13  ;;  %133 = vmatprep.subr.mxu0 %v1581_v41  ;;  %290 = vmatprep.subr.mxu1 %v289_v14  ;;  %v295_v58 = vand.u32 4294901760, %v294_v19  ;;  %v306_v62 = vsub.f32 %v1641_v8, %v2721_v47  ;;  %v2726_v63 = vand.u32 4294901760, %v1664_v48  ;;  %v1702_v47 = vld [vmem:[#allocation5 + $0x38] sm:$0xff] }
  0x2c   :  { %2942 = vst [vmem:[#allocation21_spill] sm:$0xff] %v1667_v52  ;;  %v1690_v6 = vsub.f32 %v1546_v27, %v1568_v36  ;;  %135 = vmatpush1.msra.mxu0 %v1602_v50  ;;  %v301_v26 = vand.u32 4294901760, %v300_v53  ;;  %v312_v14 = vsub.f32 %v1652_v42, %v2723_v54  ;;  %v2728_v19 = vand.u32 4294901760, %v1678_v57  ;;  %v1816_v36 = vld [vmem:[#allocation5 + $0x1f8] sm:$0xff] }
  0x2d   :  { %2943 = vst [vmem:[#allocation22_spill] sm:$0xff] %v1681_v21  ;;  %v1700_v7 = vand.u32 4294901760, %v1669_v20  ;;  %296 = vmatpush1.msra.mxu1 %v295_v58  ;;  %137 = vmatprep.subr.mxu0 %v1621_v60  ;;  %v307_v27 = vand.u32 4294901760, %v306_v62  ;;  %v318_v55 = vsub.f32 %v1664_v48, %v2726_v63  ;;  %v1711_v54 = vsub.f32 %v1548_v28, %v1581_v41 }
  0x2e   :  { %v2731_v53 = vand.u32 4294901760, %v1690_v6  ;;  %302 = vmatprep.subr.mxu1 %v301_v26  ;;  %139 = vmatpush1.msra.mxu0 %v1633_v1  ;;  %v313_v44 = vand.u32 4294901760, %v312_v14  ;;  %v324_v58 = vsub.f32 %v1678_v57, %v2728_v19  ;;  %v1720_v62 = vand.u32 4294901760, %v1692_v38 }
  0x2f   :  { %2944 = vst [vmem:[#allocation23_spill] sm:$0xff] %v1700_v7  ;;  %v1724_v63 = vsub.f32 %v1570_v37, %v1602_v50  ;;  %308 = vmatpush1.msra.mxu1 %v307_v27  ;;  %141 = vmatprep.subr.mxu0 %v1644_v12  ;;  %v319_v28 = vand.u32 4294901760, %v318_v55  ;;  %v2735_v14 = vand.u32 4294901760, %v1711_v54  ;;  %v1734_v19 = vand.u32 4294901760, %v1702_v47 }
  0x30   :  { %2945 = vst [vmem:[#allocation24_spill] sm:$0xff] %v1720_v62  ;;  %v330_v26 = vsub.f32 %v1690_v6, %v2731_v53  ;;  %314 = vmatprep.subr.mxu1 %v313_v44  ;;  %143 = vmatpush1.msra.mxu0 %v1655_v43  ;;  %v325_v37 = vand.u32 4294901760, %v324_v58  ;;  %v1742_v55 = vsub.f32 %v1594_v46, %v1621_v60  ;;  %v1745_v33 = vand.u32 4294901760, %v1713_v49  ;;  %v1747_v53 = vld [vmem:[#allocation5 + $0x18] sm:$0xff] }
  0x31   :  { %2946 = vst [vmem:[#allocation25_spill] sm:$0xff] %v1734_v19  ;;  %v2738_v27 = vand.u32 4294901760, %v1724_v63  ;;  %320 = vmatpush1.msra.mxu1 %v319_v28  ;;  %145 = vmatprep.subr.mxu0 %v1667_v52  ;;  %v336_v44 = vsub.f32 %v1711_v54, %v2735_v14  ;;  %v1755_v58 = vsub.f32 %v1604_v51, %v1633_v1  ;;  %v1758_v46 = vand.u32 4294901760, %v1726_v39  ;;  %v1772_v51 = vld [vmem:[#allocation5 + $0x10] sm:$0xff] }
  0x32   :  { %2947 = vst [vmem:[#allocation26_spill] sm:$0xff] %v1745_v33  ;;  %v331_v29 = vand.u32 4294901760, %v330_v26  ;;  %326 = vmatprep.subr.mxu1 %v325_v37  ;;  %147 = vmatpush1.msra.mxu0 %v1681_v21  ;;  %v1767_v60 = vsub.f32 %v1611_v56, %v1644_v12  ;;  %v1770_v14 = vand.u32 4294901760, %v1736_v34  ;;  %v1781_v26 = vand.u32 4294901760, %v1747_v53  ;;  %v1783_v56 = vld [vmem:[#allocation5 + $0x8] sm:$0xff] }
  0x33   :  { %2948 = vst [vmem:[#allocation27_spill] sm:$0xff] %v1758_v46  ;;  %v342_v28 = vsub.f32 %v1724_v63, %v2738_v27  ;;  %149 = vmatprep.subr.mxu0 %v1700_v7  ;;  %v337_v37 = vand.u32 4294901760, %v336_v44  ;;  %v1778_v27 = vsub.f32 %v1623_v61, %v1655_v43  ;;  %v2952_v50 = vand.u32 4294901760, %v1742_v55  ;;  %v1806_v44 = vld [vmem:[#allocation5] sm:$0xff] }
  0x34   :  { %2949 = vst [vmem:[#allocation28_spill] sm:$0xff] %v1770_v14  ;;  %332 = vmatpush1.msra.mxu1 %v331_v29  ;;  %2951 = vst [vmem:[#allocation30_spill] sm:$0xff] %v1781_v26  ;;  %151 = vmatpush1.msra.mxu0 %v1720_v62  ;;  %v1792_v1 = vsub.f32 %v1635_v2, %v1667_v52  ;;  %v2954_v61 = vand.u32 4294901760, %v1755_v58  ;;  %v1814_v41 = vand.u32 4294901760, %v1783_v56  ;;  %v1834_v24 = vand.u32 4294901760, %v1806_v44 }
  0x35   :  { %2950 = vst [vmem:[#allocation29_spill] sm:$0xff] %v1778_v27  ;;  %v343_v12 = vand.u32 4294901760, %v342_v28  ;;  %v348_v29 = vsub.f32 %v1742_v55, %v2952_v50  ;;  %338 = vmatprep.subr.mxu1 %v337_v37  ;;  %153 = vmatprep.subr.mxu0 %v1734_v19  ;;  %v1800_v28 = vand.u32 4294901760, %v1772_v51  ;;  %v1804_v50 = vsub.f32 %v1646_v13, %v1681_v21 }
  0x36   :  { %2953 = vst [vmem:[#allocation31_spill] sm:$0xff] %v1792_v1  ;;  %v354_v43 = vsub.f32 %v1755_v58, %v2954_v61  ;;  %155 = vmatpush1.msra.mxu0 %v1745_v33  ;;  %v2957_v37 = vand.u32 4294901760, %v1767_v60  ;;  %2958 = vst [vmem:[#allocation34_spill] sm:$0xff] %v1814_v41  ;;  %v2959_v13 = vand.u32 4294901760, %v1778_v27  ;;  %v1825_v21 = vsub.f32 %v1669_v20, %v1700_v7 }
  0x37   :  { %2955 = vst [vmem:[#allocation32_spill] sm:$0xff] %v1800_v28  ;;  %2956 = vst [vmem:[#allocation33_spill] sm:$0xff] %v1804_v50  ;;  %344 = vmatpush1.msra.mxu1 %v343_v12  ;;  %v349_v2 = vand.u32 4294901760, %v348_v29  ;;  %157 = vmatprep.subr.mxu0 %v1758_v46  ;;  %v1840_v29 = vld [vmem:[#allocation5 + $0x1e8] sm:$0xff] }
  0x38   :  { %v360_v52 = vsub.f32 %v1767_v60, %v2957_v37  ;;  %v355_v32 = vand.u32 4294901760, %v354_v43  ;;  %v366_v12 = vsub.f32 %v1778_v27, %v2959_v13  ;;  %2960 = vst [vmem:[#allocation35_spill] sm:$0xff] %v1825_v21  ;;  %v1827_v37 = vld [vmem:[#allocation5 + $0x1f0] sm:$0xff]  ;;  %159 = vmatpush1.msra.mxu0 %v1770_v14  ;;  %v2961_v43 = vand.u32 4294901760, %v1792_v1  ;;  %2962 = vst [vmem:[#allocation36_spill] sm:$0xff] %v1834_v24 }
  0x39   :  { %350 = vmatprep.subr.mxu1 %v349_v2  ;;  %v1838_v13 = vsub.f32 %v1692_v38, %v1720_v62  ;;  %161 = vmatprep.subr.mxu0 %v1781_v26  ;;  %v1859_v62 = vand.u32 4294901760, %v1827_v37 }
  0x3a   :  { %v361_v61 = vand.u32 4294901760, %v360_v52  ;;  %v372_v30 = vsub.f32 %v1792_v1, %v2961_v43  ;;  %356 = vmatpush1.msra.mxu1 %v355_v32  ;;  %v367_v20 = vand.u32 4294901760, %v366_v12  ;;  %v2964_v52 = vand.u32 4294901760, %v1804_v50  ;;  %v1850_v1 = vld [vmem:[#allocation5 + $0x1e0] sm:$0xff]  ;;  %163 = vmatpush1.msra.mxu0 %v1800_v28 }
  0x3b   :  { %2963 = vst [vmem:[#allocation37_spill] sm:$0xff] %v1838_v13  ;;  %v1848_v43 = vand.u32 4294901760, %v1816_v36  ;;  %v1856_v12 = vsub.f32 %v1702_v47, %v1734_v19  ;;  %2967 = vst [vmem:[#allocation40_spill] sm:$0xff] %v1859_v62  ;;  %165 = vmatprep.subr.mxu0 %v1814_v41  ;;  %v1869_v32 = vsub.f32 %v1713_v49, %v1745_v33  ;;  %v1872_v47 = vand.u32 4294901760, %v1840_v29  ;;  %v1886_v49 = vld [vmem:[#allocation5 + $0x1d0] sm:$0xff] }
  0x3c   :  { %v378_v2 = vsub.f32 %v1804_v50, %v2964_v52  ;;  %362 = vmatprep.subr.mxu1 %v361_v61  ;;  %v373_v38 = vand.u32 4294901760, %v372_v30  ;;  %v1861_v52 = vld [vmem:[#allocation5 + $0x1d8] sm:$0xff]  ;;  %v2968_v61 = vand.u32 4294901760, %v1825_v21  ;;  %167 = vmatpush1.msra.mxu0 %v1834_v24  ;;  %v2971_v19 = vand.u32 4294901760, %v1838_v13 }
  0x3d   :  { %2965 = vst [vmem:[#allocation38_spill] sm:$0xff] %v1848_v43  ;;  %2966 = vst [vmem:[#allocation39_spill] sm:$0xff] %v1856_v12  ;;  %368 = vmatpush1.msra.mxu1 %v367_v20  ;;  %v1881_v50 = vsub.f32 %v1726_v39, %v1758_v46  ;;  %169 = vmatprep.subr.mxu0 %v1848_v43  ;;  %v1897_v39 = vld [vmem:[#allocation5 + $0x1c8] sm:$0xff] }
  0x3e   :  { %v379_v7 = vand.u32 4294901760, %v378_v2  ;;  %v384_v30 = vsub.f32 %v1825_v21, %v2968_v61  ;;  %2969 = vst [vmem:[#allocation41_spill] sm:$0xff] %v1869_v32  ;;  %2970 = vst [vmem:[#allocation42_spill] sm:$0xff] %v1872_v47  ;;  %374 = vmatprep.subr.mxu1 %v373_v38  ;;  %v390_v20 = vsub.f32 %v1838_v13, %v2971_v19  ;;  %v1884_v61 = vand.u32 4294901760, %v1850_v1 }
  0x3f   :  { %2972 = vst [vmem:[#allocation43_spill] sm:$0xff] %v1881_v50  ;;  %v2781_v38 = vand.u32 4294901760, %v1869_v32  ;;  %v1892_v19 = vsub.f32 %v1736_v34, %v1770_v14  ;;  %v1895_v2 = vand.u32 4294901760, %v1861_v52  ;;  %v2976_v13 = vand.u32 4294901760, %v1856_v12  ;;  %171 = vmatpush2.msra.mxu0 %v1859_v62 }
  0x40   :  { %2973 = vst [vmem:[#allocation44_spill] sm:$0xff] %v1884_v61  ;;  %380 = vmatpush1.msra.mxu1 %v379_v7  ;;  %v385_v33 = vand.u32 4294901760, %v384_v30  ;;  %v391_v46 = vand.u32 4294901760, %v390_v20  ;;  %v1906_v30 = vsub.f32 %v1747_v53, %v1781_v26  ;;  %173 = vmatprep.subr.mxu0 %v1872_v47  ;;  %v1914_v14 = vand.u32 4294901760, %v1886_v49  ;;  %v1920_v7 = vld [vmem:[#allocation5 + $0x1c0] sm:$0xff] }
  0x41   :  { %2974 = vst [vmem:[#allocation45_spill] sm:$0xff] %v1892_v19  ;;  %2975 = vst [vmem:[#allocation46_spill] sm:$0xff] %v1895_v2  ;;  %v396_v21 = vsub.f32 %v1856_v12, %v2976_v13  ;;  %v402_v34 = vsub.f32 %v1869_v32, %v2781_v38  ;;  %v1918_v13 = vsub.f32 %v1772_v51, %v1800_v28  ;;  %175 = vmatpush2.msra.mxu0 %v1884_v61  ;;  %v1930_v32 = vld [vmem:[#allocation5 + $0x1b8] sm:$0xff] }
  0x42   :  { %2977 = vst [vmem:[#allocation47_spill] sm:$0xff] %v1906_v30  ;;  %386 = vmatprep.subr.mxu1 %v385_v33  ;;  %2978 = vst [vmem:[#allocation48_spill] sm:$0xff] %v1914_v14  ;;  %v2980_v33 = vand.u32 4294901760, %v1881_v50  ;;  %v1928_v20 = vand.u32 4294901760, %v1897_v39  ;;  %v2982_v51 = vand.u32 4294901760, %v1892_v19  ;;  %177 = vmatprep.subr.mxu0 %v1895_v2 }
  0x43   :  { %2979 = vst [vmem:[#allocation49_spill] sm:$0xff] %v1918_v13  ;;  %392 = vmatpush1.msra.mxu1 %v391_v46  ;;  %v397_v53 = vand.u32 4294901760, %v396_v21  ;;  %v403_v12 = vand.u32 4294901760, %v402_v34  ;;  %v1939_v46 = vsub.f32 %v1783_v56, %v1814_v41  ;;  %179 = vmatpush2.msra.mxu0 %v1914_v14  ;;  %v1952_v21 = vsub.f32 %v1806_v44, %v1834_v24  ;;  %v1975_v24 = vld [vmem:[#allocation5 + $0x198] sm:$0xff] }
  0x44   :  { %v408_v26 = vsub.f32 %v1881_v50, %v2980_v33  ;;  %2981 = vst [vmem:[#allocation50_spill] sm:$0xff] %v1928_v20  ;;  %v414_v28 = vsub.f32 %v1892_v19, %v2982_v51  ;;  %v1941_v33 = vld [vmem:[#allocation5 + $0x1b0] sm:$0xff]  ;;  %v2984_v50 = vand.u32 4294901760, %v1906_v30  ;;  %v1948_v51 = vand.u32 4294901760, %v1920_v7  ;;  %v1954_v19 = vld [vmem:[#allocation5 + $0x1a8] sm:$0xff]  ;;  %181 = vmatprep.subr.mxu0 %v1928_v20 }
  0x45   :  { %2983 = vst [vmem:[#allocation51_spill] sm:$0xff] %v1939_v46  ;;  %398 = vmatprep.subr.mxu1 %v397_v53  ;;  %2986 = vst [vmem:[#allocation53_spill] sm:$0xff] %v1952_v21  ;;  %v2987_v53 = vand.u32 4294901760, %v1918_v13  ;;  %v1962_v41 = vand.u32 4294901760, %v1930_v32 }
  0x46   :  { %v409_v38 = vand.u32 4294901760, %v408_v26  ;;  %v420_v34 = vsub.f32 %v1906_v30, %v2984_v50  ;;  %2985 = vst [vmem:[#allocation52_spill] sm:$0xff] %v1948_v51  ;;  %404 = vmatpush1.msra.mxu1 %v403_v12  ;;  %v415_v56 = vand.u32 4294901760, %v414_v28  ;;  %v1964_v30 = vld [vmem:[#allocation5 + $0x1a0] sm:$0xff]  ;;  %183 = vmatpush2.msra.mxu0 %v1948_v51  ;;  %v2804_v12 = vand.u32 4294901760, %v1952_v21 }
  0x47   :  { %v426_v26 = vsub.f32 %v1918_v13, %v2987_v53  ;;  %2988 = vst [vmem:[#allocation54_spill] sm:$0xff] %v1962_v41  ;;  %v1970_v28 = vsub.f32 %v1816_v36, %v1848_v43  ;;  %v1973_v53 = vand.u32 4294901760, %v1941_v33  ;;  %v2991_v13 = vand.u32 4294901760, %v1939_v46  ;;  %185 = vmatprep.subr.mxu0 %v1962_v41 }
  0x48   :  { %410 = vmatprep.subr.mxu1 %v409_v38  ;;  %v421_v44 = vand.u32 4294901760, %v420_v34  ;;  %v1983_v34 = vsub.f32 %v1827_v37, %v1859_v62  ;;  %v1986_v36 = vand.u32 4294901760, %v1954_v19  ;;  %v438_v43 = vsub.f32 %v1952_v21, %v2804_v12  ;;  %v2000_v37 = vld [vmem:[#allocation5 + $0x190] sm:$0xff] }
  0x49   :  { %2989 = vst [vmem:[#allocation55_spill] sm:$0xff] %v1970_v28  ;;  %2990 = vst [vmem:[#allocation56_spill] sm:$0xff] %v1973_v53  ;;  %416 = vmatpush1.msra.mxu1 %v415_v56  ;;  %v427_v50 = vand.u32 4294901760, %v426_v26  ;;  %v432_v38 = vsub.f32 %v1939_v46, %v2991_v13  ;;  %187 = vmatpush2.msra.mxu0 %v1973_v53  ;;  %v1995_v13 = vsub.f32 %v1840_v29, %v1872_v47  ;;  %v2011_v29 = vld [vmem:[#allocation5 + $0x188] sm:$0xff] }
  0x4a   :  { %2992 = vst [vmem:[#allocation57_spill] sm:$0xff] %v1983_v34  ;;  %2993 = vst [vmem:[#allocation58_spill] sm:$0xff] %v1986_v36  ;;  %422 = vmatprep.subr.mxu1 %v421_v44  ;;  %v1998_v26 = vand.u32 4294901760, %v1964_v30  ;;  %v2815_v44 = vand.u32 4294901760, %v1983_v34  ;;  %189 = vmatprep.subr.mxu0 %v1986_v36  ;;  %v2006_v12 = vsub.f32 %v1850_v1, %v1884_v61  ;;  %v2009_v56 = vand.u32 4294901760, %v1975_v24 }
  0x4b   :  { %2994 = vst [vmem:[#allocation59_spill] sm:$0xff] %v1995_v13  ;;  %428 = vmatpush1.msra.mxu1 %v427_v50  ;;  %v433_v62 = vand.u32 4294901760, %v432_v38  ;;  %v439_v47 = vand.u32 4294901760, %v438_v43  ;;  %v2998_v21 = vand.u32 4294901760, %v1970_v28  ;;  %v2020_v38 = vsub.f32 %v1861_v52, %v1895_v2  ;;  %v2034_v50 = vld [vmem:[#allocation5 + $0x180] sm:$0xff] }
  0x4c   :  { %2995 = vst [vmem:[#allocation60_spill] sm:$0xff] %v1998_v26  ;;  %2996 = vst [vmem:[#allocation61_spill] sm:$0xff] %v2006_v12  ;;  %191 = vmatpush2.msra.mxu0 %v1998_v26  ;;  %v450_v1 = vsub.f32 %v1983_v34, %v2815_v44  ;;  %v2028_v43 = vand.u32 4294901760, %v2000_v37  ;;  %v2041_v61 = vand.u32 4294901760, %v2011_v29  ;;  %v2043_v34 = vld [vmem:[#allocation5 + $0x178] sm:$0xff]  ;;  %v3004_v27 = vand.u32 4294901760, %v2006_v12 }
  0x4d   :  { %2997 = vst [vmem:[#allocation62_spill] sm:$0xff] %v2009_v56  ;;  %v444_v46 = vsub.f32 %v1970_v28, %v2998_v21  ;;  %2999 = vst [vmem:[#allocation63_spill] sm:$0xff] %v2020_v38  ;;  %434 = vmatprep.subr.mxu1 %v433_v62  ;;  %193 = vmatprep.subr.mxu0 %v2009_v56  ;;  %v2032_v21 = vsub.f32 %v1886_v49, %v1914_v14  ;;  %v3002_v62 = vand.u32 4294901760, %v1995_v13 }
  0x4e   :  { %3000 = vst [vmem:[#allocation64_spill] sm:$0xff] %v2028_v43  ;;  %440 = vmatpush1.msra.mxu1 %v439_v47  ;;  %3003 = vst [vmem:[#allocation66_spill] sm:$0xff] %v2041_v61  ;;  %v451_v28 = vand.u32 4294901760, %v450_v1  ;;  %v462_v49 = vsub.f32 %v2006_v12, %v3004_v27  ;;  %195 = vmatpush2.msra.mxu0 %v2028_v43  ;;  %v3006_v14 = vand.u32 4294901760, %v2020_v38  ;;  %v2061_v27 = vand.u32 4294901760, %v2034_v50  ;;  %v2067_v12 = vld [vmem:[#allocation5 + $0x168] sm:$0xff] }
  0x4f   :  { %3001 = vst [vmem:[#allocation65_spill] sm:$0xff] %v2032_v21  ;;  %v445_v52 = vand.u32 4294901760, %v444_v46  ;;  %v456_v2 = vsub.f32 %v1995_v13, %v3002_v62  ;;  %v2052_v46 = vsub.f32 %v1897_v39, %v1928_v20  ;;  %v2054_v62 = vld [vmem:[#allocation5 + $0x170] sm:$0xff]  ;;  %197 = vmatprep.subr.mxu0 %v2041_v61  ;;  %v2065_v47 = vsub.f32 %v1920_v7, %v1948_v51 }
  0x50   :  { %v468_v1 = vsub.f32 %v2020_v38, %v3006_v14  ;;  %3007 = vst [vmem:[#allocation68_spill] sm:$0xff] %v2061_v27  ;;  %v463_v39 = vand.u32 4294901760, %v462_v49  ;;  %v2074_v14 = vand.u32 4294901760, %v2043_v34  ;;  %v2076_v38 = vld [vmem:[#allocation5 + $0x160] sm:$0xff]  ;;  %199 = vmatpush2.msra.mxu0 %v2061_v27  ;;  %v2085_v49 = vand.u32 4294901760, %v2054_v62 }
  0x51   :  { %3005 = vst [vmem:[#allocation67_spill] sm:$0xff] %v2052_v46  ;;  %446 = vmatprep.subr.mxu1 %v445_v52  ;;  %v457_v44 = vand.u32 4294901760, %v456_v2  ;;  %3008 = vst [vmem:[#allocation69_spill] sm:$0xff] %v2065_v47  ;;  %v3009_v52 = vand.u32 4294901760, %v2032_v21  ;;  %v2838_v7 = vand.u32 4294901760, %v2065_v47  ;;  %v3013_v51 = vand.u32 4294901760, %v2052_v46 }
  0x52   :  { %452 = vmatpush2.msra.mxu1 %v451_v28  ;;  %3010 = vst [vmem:[#allocation70_spill] sm:$0xff] %v2074_v14  ;;  %v469_v13 = vand.u32 4294901760, %v468_v1  ;;  %v2082_v28 = vsub.f32 %v1930_v32, %v1962_v41  ;;  %3012 = vst [vmem:[#allocation72_spill] sm:$0xff] %v2085_v49  ;;  %201 = vmatprep.subr.mxu0 %v2074_v14  ;;  %v2095_v1 = vsub.f32 %v1941_v33, %v1973_v53  ;;  %v2112_v33 = vld [vmem:[#allocation5 + $0x150] sm:$0xff] }
  0x53   :  { %v474_v2 = vsub.f32 %v2032_v21, %v3009_v52  ;;  %458 = vmatprep.subr.mxu1 %v457_v44  ;;  %v2087_v52 = vld [vmem:[#allocation5 + $0x158] sm:$0xff]  ;;  %v480_v44 = vsub.f32 %v2052_v46, %v3013_v51  ;;  %v2098_v32 = vand.u32 4294901760, %v2067_v12  ;;  %v486_v41 = vsub.f32 %v2065_v47, %v2838_v7  ;;  %203 = vmatpush2.msra.mxu0 %v2085_v49 }
  0x54   :  { %3011 = vst [vmem:[#allocation71_spill] sm:$0xff] %v2082_v28  ;;  %464 = vmatpush2.msra.mxu1 %v463_v39  ;;  %3014 = vst [vmem:[#allocation73_spill] sm:$0xff] %v2095_v1  ;;  %v2107_v51 = vsub.f32 %v1954_v19, %v1986_v36  ;;  %v2118_v7 = vsub.f32 %v1964_v30, %v1998_v26  ;;  %v2121_v39 = vand.u32 4294901760, %v2087_v52  ;;  %v2123_v19 = vld [vmem:[#allocation5 + $0x148] sm:$0xff]  ;;  %v3020_v47 = vand.u32 4294901760, %v2082_v28 }
  0x55   :  { %v475_v20 = vand.u32 4294901760, %v474_v2  ;;  %3015 = vst [vmem:[#allocation74_spill] sm:$0xff] %v2098_v32  ;;  %470 = vmatprep.subr.mxu1 %v469_v13  ;;  %v2110_v2 = vand.u32 4294901760, %v2076_v38  ;;  %v481_v53 = vand.u32 4294901760, %v480_v44  ;;  %v2849_v13 = vand.u32 4294901760, %v2095_v1  ;;  %205 = vmatprep.subr.mxu0 %v2098_v32 }
  0x56   :  { %3016 = vst [vmem:[#allocation75_spill] sm:$0xff] %v2107_v51  ;;  %3018 = vst [vmem:[#allocation77_spill] sm:$0xff] %v2118_v7  ;;  %v487_v36 = vand.u32 4294901760, %v486_v41  ;;  %v492_v46 = vsub.f32 %v2082_v28, %v3020_v47  ;;  %v2132_v44 = vsub.f32 %v1975_v24, %v2009_v56  ;;  %v2140_v41 = vand.u32 4294901760, %v2112_v33 }
  0x57   :  { %3017 = vst [vmem:[#allocation76_spill] sm:$0xff] %v2110_v2  ;;  %476 = vmatpush2.msra.mxu1 %v475_v20  ;;  %3019 = vst [vmem:[#allocation78_spill] sm:$0xff] %v2121_v39  ;;  %207 = vmatpush2.msra.mxu0 %v2110_v2  ;;  %v498_v30 = vsub.f32 %v2095_v1, %v2849_v13  ;;  %v2144_v47 = vsub.f32 %v2000_v37, %v2028_v43  ;;  %v2146_v20 = vld [vmem:[#allocation5 + $0x140] sm:$0xff]  ;;  %v2153_v26 = vand.u32 4294901760, %v2123_v19  ;;  %v2155_v1 = vld [vmem:[#allocation5 + $0x138] sm:$0xff] }
  0x58   :  { %3021 = vst [vmem:[#allocation79_spill] sm:$0xff] %v2132_v44  ;;  %482 = vmatprep.subr.mxu1 %v481_v53  ;;  %209 = vmatprep.subr.mxu0 %v2121_v39  ;;  %3022 = vst [vmem:[#allocation80_spill] sm:$0xff] %v2140_v41  ;;  %v493_v24 = vand.u32 4294901760, %v492_v46  ;;  %v3024_v53 = vand.u32 4294901760, %v2107_v51  ;;  %v3026_v21 = vand.u32 4294901760, %v2118_v7  ;;  %v2164_v46 = vsub.f32 %v2011_v29, %v2041_v61 }
  0x59   :  { %3023 = vst [vmem:[#allocation81_spill] sm:$0xff] %v2144_v47  ;;  %488 = vmatpush2.msra.mxu1 %v487_v36  ;;  %3025 = vst [vmem:[#allocation82_spill] sm:$0xff] %v2153_v26  ;;  %v499_v28 = vand.u32 4294901760, %v498_v30  ;;  %211 = vmatpush2.msra.mxu0 %v2140_v41  ;;  %v3028_v43 = vand.u32 4294901760, %v2132_v44  ;;  %v2177_v36 = vsub.f32 %v2034_v50, %v2061_v27 }
  0x5a   :  { %v504_v56 = vsub.f32 %v2107_v51, %v3024_v53  ;;  %v510_v37 = vsub.f32 %v2118_v7, %v3026_v21  ;;  %3027 = vst [vmem:[#allocation83_spill] sm:$0xff] %v2164_v46  ;;  %v2166_v53 = vld [vmem:[#allocation5 + $0x130] sm:$0xff]  ;;  %494 = vmatprep.subr.mxu1 %v493_v24  ;;  %213 = vmatprep.subr.mxu0 %v2153_v26  ;;  %v2173_v21 = vand.u32 4294901760, %v2146_v20  ;;  %v2179_v7 = vld [vmem:[#allocation5 + $0x128] sm:$0xff]  ;;  %v3031_v24 = vand.u32 4294901760, %v2144_v47 }
  0x5b   :  { %v516_v30 = vsub.f32 %v2132_v44, %v3028_v43  ;;  %3030 = vst [vmem:[#allocation85_spill] sm:$0xff] %v2177_v36  ;;  %500 = vmatpush2.msra.mxu1 %v499_v28  ;;  %v2186_v43 = vand.u32 4294901760, %v2155_v1  ;;  %v2188_v44 = vld [vmem:[#allocation5 + $0x120] sm:$0xff]  ;;  %v2872_v50 = vand.u32 4294901760, %v2177_v36  ;;  %v2194_v28 = vsub.f32 %v2043_v34, %v2074_v14 }
  0x5c   :  { %v505_v13 = vand.u32 4294901760, %v504_v56  ;;  %3029 = vst [vmem:[#allocation84_spill] sm:$0xff] %v2173_v21  ;;  %v511_v29 = vand.u32 4294901760, %v510_v37  ;;  %v522_v56 = vsub.f32 %v2144_v47, %v3031_v24  ;;  %215 = vmatpush2.msra.mxu0 %v2173_v21  ;;  %v2197_v37 = vand.u32 4294901760, %v2166_v53  ;;  %v2199_v24 = vld [vmem:[#allocation5 + $0x118] sm:$0xff] }
  0x5d   :  { %v517_v51 = vand.u32 4294901760, %v516_v30  ;;  %3032 = vst [vmem:[#allocation86_spill] sm:$0xff] %v2194_v28  ;;  %v3033_v27 = vand.u32 4294901760, %v2164_v46  ;;  %217 = vmatprep.subr.mxu0 %v2186_v43  ;;  %v2207_v30 = vsub.f32 %v2054_v62, %v2085_v49  ;;  %v2210_v34 = vand.u32 4294901760, %v2179_v7  ;;  %v2224_v62 = vld [vmem:[#allocation5 + $0x110] sm:$0xff] }
  0x5e   :  { %506 = vmatprep.subr.mxu1 %v505_v13  ;;  %v523_v61 = vand.u32 4294901760, %v522_v56  ;;  %v534_v14 = vsub.f32 %v2177_v36, %v2872_v50  ;;  %219 = vmatpush2.msra.mxu0 %v2197_v37  ;;  %v2222_v56 = vand.u32 4294901760, %v2188_v44  ;;  %v2230_v50 = vsub.f32 %v2076_v38, %v2110_v2 }
  0x5f   :  { %512 = vmatpush2.msra.mxu1 %v511_v29  ;;  %v528_v13 = vsub.f32 %v2164_v46, %v3033_v27  ;;  %3034 = vst [vmem:[#allocation87_spill] sm:$0xff] %v2207_v30  ;;  %3035 = vst [vmem:[#allocation88_spill] sm:$0xff] %v2210_v34  ;;  %v2219_v27 = vsub.f32 %v2067_v12, %v2098_v32  ;;  %221 = vmatprep.subr.mxu0 %v2210_v34  ;;  %v2233_v29 = vand.u32 4294901760, %v2199_v24  ;;  %v2235_v12 = vld [vmem:[#allocation5 + $0x108] sm:$0xff] }
  0x60   :  { %518 = vmatprep.subr.mxu1 %v517_v51  ;;  %3037 = vst [vmem:[#allocation90_spill] sm:$0xff] %v2222_v56  ;;  %v2883_v51 = vand.u32 4294901760, %v2207_v30  ;;  %3038 = vst [vmem:[#allocation91_spill] sm:$0xff] %v2230_v50  ;;  %v535_v32 = vand.u32 4294901760, %v534_v14  ;;  %v3040_v36 = vand.u32 4294901760, %v2194_v28  ;;  %223 = vmatpush2.msra.mxu0 %v2222_v56  ;;  %v2252_v14 = vand.u32 4294901760, %v2224_v62 }
  0x61   :  { %3036 = vst [vmem:[#allocation89_spill] sm:$0xff] %v2219_v27  ;;  %524 = vmatpush2.msra.mxu1 %v523_v61  ;;  %v529_v49 = vand.u32 4294901760, %v528_v13  ;;  %3039 = vst [vmem:[#allocation92_spill] sm:$0xff] %v2233_v29  ;;  %v2244_v13 = vsub.f32 %v2087_v52, %v2121_v39  ;;  %225 = vmatprep.subr.mxu0 %v2233_v29  ;;  %v2258_v61 = vld [vmem:[#allocation5 + $0x100] sm:$0xff]  ;;  %v2265_v2 = vand.u32 4294901760, %v2235_v12  ;;  %v3044_v47 = vand.u32 4294901760, %v2230_v50 }
  0x62   :  { %v540_v46 = vsub.f32 %v2194_v28, %v3040_v36  ;;  %v546_v38 = vsub.f32 %v2207_v30, %v2883_v51  ;;  %v2256_v36 = vsub.f32 %v2112_v33, %v2140_v41  ;;  %v39_v30 = vld [vmem:[#allocation2 + $0x8] sm:$0xff]  ;;  %227 = vmatpush2.msra.mxu0 %v2252_v14 }
  0x63   :  { %3041 = vst [vmem:[#allocation93_spill] sm:$0xff] %v2244_v13  ;;  %530 = vmatprep.subr.mxu1 %v529_v49  ;;  %v3043_v49 = vand.u32 4294901760, %v2219_v27  ;;  %v558_v33 = vsub.f32 %v2230_v50, %v3044_v47  ;;  %v3046_v41 = vand.u32 4294901760, %v2244_v13  ;;  %229 = vmatprep.subr.mxu0 %v2265_v2  ;;  %v2285_v47 = vsub.f32 %v2146_v20, %v2173_v21 }
  0x64   :  { %3042 = vst [vmem:[#allocation94_spill] sm:$0xff] %v2256_v36  ;;  %536 = vmatpush2.msra.mxu1 %v535_v32  ;;  %v541_v52 = vand.u32 4294901760, %v540_v46  ;;  %v547_v28 = vand.u32 4294901760, %v546_v38  ;;  %v2274_v46 = vsub.f32 %v2123_v19, %v2153_v26  ;;  %v2281_v38 = vand.u32 4294901760, %v2258_v61 }
  0x65   :  { %v552_v39 = vsub.f32 %v2219_v27, %v3043_v49  ;;  %v38_v49 = vld [vmem:[#allocation2] sm:$0xff]  ;;  %v564_v27 = vsub.f32 %v2244_v13, %v3046_v41  ;;  %3047 = vst [vmem:[#allocation96_spill] sm:$0xff] %v2285_v47  ;;  %v559_v32 = vand.u32 4294901760, %v558_v33  ;;  %v3048_v19 = vand.u32 4294901760, %v2256_v36 }
  0x66   :  { %3045 = vst [vmem:[#allocation95_spill] sm:$0xff] %v2274_v46  ;;  %542 = vmatprep.subr.mxu1 %v541_v52  ;;  %v2291_v26 = vand.u32 4294901760, %v39_v30  ;;  %231 = vmatpush2.msra.mxu0 %v2281_v38  ;;  %v2900_v13 = vand.u32 4294901760, %v2285_v47  ;;  %v2297_v20 = vsub.f32 %v2155_v1, %v2186_v43 }
  0x67   :  { %v553_v51 = vand.u32 4294901760, %v552_v39  ;;  %548 = vmatpush2.msra.mxu1 %v547_v28  ;;  %v570_v52 = vsub.f32 %v2256_v36, %v3048_v19  ;;  %v2901_v39 = vand.u32 4294901760, %v2274_v46  ;;  %v565_v41 = vand.u32 4294901760, %v564_v27  ;;  %644 = vmatprep.subr.mxu0 %v1523_v18 }
  0x68   :  { %3049 = vst [vmem:[#allocation97_spill] sm:$0xff] %v2291_v26  ;;  %3050 = vst [vmem:[#allocation98_spill] sm:$0xff] %v2297_v20  ;;  %v2299_v28 = vand.u32 4294901760, %v38_v49  ;;  %v2305_v21 = vsub.f32 %v39_v30, %v2291_v26  ;;  %v2310_v27 = vsub.f32 %v2166_v53, %v2197_v37  ;;  %v582_v1 = vsub.f32 %v2285_v47, %v2900_v13 }
  0x69   :  { %554 = vmatprep.subr.mxu1 %v553_v51  ;;  %v571_v33 = vand.u32 4294901760, %v570_v52  ;;  %v576_v19 = vsub.f32 %v2274_v46, %v2901_v39  ;;  %v2904_v51 = vand.u32 4294901760, %v2297_v20  ;;  %v2321_v30 = vsub.f32 %v2179_v7, %v2210_v34  ;;  %634 = vmatprep.mubr.f32.mxu1 %v2291_v26 }
  0x6a   :  { %3051 = vst [vmem:[#allocation99_spill] sm:$0xff] %v2299_v28  ;;  %560 = vmatpush2.msra.mxu1 %v559_v32  ;;  %3052 = vst [vmem:[#allocation100_spill] sm:$0xff] %v2310_v27  ;;  %v2317_v32 = vsub.f32 %v38_v49, %v2299_v28  ;;  %v2905_v53 = vand.u32 4294901760, %v2305_v21  ;;  %v2328_v13 = vsub.f32 %v2188_v44, %v2222_v56  ;;  %v583_v39 = vand.u32 4294901760, %v582_v1 }
  0x6b   :  { %566 = vmatprep.subr.mxu1 %v565_v41  ;;  %3053 = vst [vmem:[#allocation101_spill] sm:$0xff] %v2321_v30  ;;  %v577_v52 = vand.u32 4294901760, %v576_v19  ;;  %v2908_v41 = vand.u32 4294901760, %v2310_v27  ;;  %v588_v49 = vsub.f32 %v2297_v20, %v2904_v51  ;;  %v2914_v34 = vand.u32 4294901760, %v2321_v30 }
  0x6c   :  { %572 = vmatpush2.msra.mxu1 %v571_v33  ;;  %v2913_v7 = vand.u32 4294901760, %v2317_v32  ;;  %v235_v33 = vsub.f32 %v2305_v21, %v2905_v53  ;;  %v2344_v1 = vsub.f32 %v2199_v24, %v2233_v29  ;;  %v2354_v26 = vsub.f32 %v2224_v62, %v2252_v14 }
  0x6d   :  { %578 = vmatprep.subr.mxu1 %v577_v52  ;;  %v594_v19 = vsub.f32 %v2310_v27, %v2908_v41  ;;  %v589_v51 = vand.u32 4294901760, %v588_v49  ;;  %v600_v53 = vsub.f32 %v2321_v30, %v2914_v34  ;;  %v3056_v56 = vand.u32 4294901760, %v2328_v13 }
  0x6e   :  { %3054 = vst [vmem:[#allocation102_spill] sm:$0xff] %v2344_v1  ;;  %584 = vmatpush2.msra.mxu1 %v583_v39  ;;  %v241_v52 = vsub.f32 %v2317_v32, %v2913_v7  ;;  %3055 = vst [vmem:[#allocation103_spill] sm:$0xff] %v2354_v26  ;;  %v236_v41 = vand.u32 4294901760, %v235_v33  ;;  %v2918_v39 = vand.u32 4294901760, %v2344_v1  ;;  %v2917_v7 = vand.u32 4294901760, %v2354_v26 }
  0x6f   :  { %v595_v44 = vand.u32 4294901760, %v594_v19  ;;  %v606_v24 = vsub.f32 %v2328_v13, %v3056_v56  ;;  %590 = vmatprep.subr.mxu1 %v589_v51  ;;  %v601_v29 = vand.u32 4294901760, %v600_v53  ;;  %v2363_v34 = vsub.f32 %v2235_v12, %v2265_v2 }
  0x70   :  { %v242_v49 = vand.u32 4294901760, %v241_v52  ;;  %237 = vmatprep.mubr.f32.mxu0 %v236_v41  ;;  %v612_v33 = vsub.f32 %v2344_v1, %v2918_v39  ;;  %v2370_v56 = vsub.f32 %v2258_v61, %v2281_v38  ;;  %v618_v51 = vsub.f32 %v2354_v26, %v2917_v7  ;;  %v3072_v7 = vld [vmem:[#allocation41_spill] sm:$0xff]  ;;  %v3073_v39 = vld [vmem:[#allocation18_spill] sm:$0xff] }
  0x71   :  { %3057 = vst [vmem:[#allocation104_spill] sm:$0xff] %v2363_v34  ;;  %596 = vmatpush2.msra.mxu1 %v595_v44  ;;  %v607_v62 = vand.u32 4294901760, %v606_v24  ;;  %v2916_v12 = vand.u32 4294901760, %v2363_v34  ;;  %v3059_v24 = vld [vmem:[#allocation11_spill] sm:$0xff] }
  0x72   :  { %3058 = vst [vmem:[#allocation105_spill] sm:$0xff] %v2370_v56  ;;  %243 = vmatmul.mubr.f32.vlgmr.msra.gmra.mxu0 %v242_v49  ;;  %602 = vmatprep.subr.mxu1 %v601_v29  ;;  %v613_v53 = vand.u32 4294901760, %v612_v33  ;;  %v2915_v41 = vand.u32 4294901760, %v2370_v56  ;;  %v619_v19 = vand.u32 4294901760, %v618_v51  ;;  %v3060_v49 = vld [vmem:[#allocation29_spill] sm:$0xff]  ;;  %v3062_v33 = vld [vmem:[#allocation31_spill] sm:$0xff] }
  0x73   :  { %647 = vmatpush1.msra.mxu0 %v1536_v23  ;;  %608 = vmatpush2.msra.mxu1 %v607_v62  ;;  %v624_v61 = vsub.f32 %v2363_v34, %v2916_v12  ;;  %v3061_v62 = vld [vmem:[#allocation12_spill] sm:$0xff]  ;;  %v3063_v51 = vld [vmem:[#allocation13_spill] sm:$0xff] }
  0x74   :  { %650 = vmatprep.subr.mxu0 %v1542_v25  ;;  %836 = vmatprep.mubr.f32.mxu0 %v2305_v21  ;;  %v630_v29 = vsub.f32 %v2370_v56, %v2915_v41  ;;  %v3070_v41 = vld [vmem:[#allocation39_spill] sm:$0xff]  ;;  %v3071_v12 = vld [vmem:[#allocation17_spill] sm:$0xff] }
  0x75   :  { %653 = vmatpush1.msra.mxu0 %v1556_v31  ;;  %614 = vmatprep.subr.mxu1 %v613_v53  ;;  %v625_v44 = vand.u32 4294901760, %v624_v61  ;;  %v3064_v53 = vld [vmem:[#allocation33_spill] sm:$0xff]  ;;  %v3066_v61 = vld [vmem:[#allocation35_spill] sm:$0xff] }
  0x76   :  { %656 = vmatprep.subr.mxu0 %v1565_v35  ;;  %620 = vmatpush2.msra.mxu1 %v619_v19  ;;  %v631_v52 = vand.u32 4294901760, %v630_v29  ;;  %v3065_v19 = vld [vmem:[#allocation14_spill] sm:$0xff]  ;;  %v3067_v29 = vld [vmem:[#allocation15_spill] sm:$0xff] }
  0x77   :  { %659 = vmatpush1.msra.mxu0 %v1578_v40  ;;  %626 = vmatprep.subr.mxu1 %v625_v44  ;;  %v3068_v44 = vld [vmem:[#allocation37_spill] sm:$0xff] }
  0x78   :  { %662 = vmatprep.subr.mxu0 %v1592_v45  ;;  %632 = vmatpush2.msra.mxu1 %v631_v52  ;;  %v3069_v52 = vld [vmem:[#allocation16_spill] sm:$0xff] }
  0x79   :  { %665 = vmatpush1.msra.mxu0 %v1618_v59  ;;  %636 = vmatmul.mubr.f32.vlgmr.msra.gmra.mxu1 %v2299_v28  ;;  %v3074_v28 = vld [vmem:[#allocation43_spill] sm:$0xff] }
  0x7a   :  { %668 = vmatprep.subr.mxu0 %v1630_v0  ;;  %846 = vmatprep.subr.mxu1 %v1503_v3 }
  0x7b   :  { %671 = vmatpush1.msra.mxu0 %v1641_v8  ;;  %848 = vmatpush1.msra.mxu1 %v1505_v4 }
  0x7c   :  { %674 = vmatprep.subr.mxu0 %v1652_v42  ;;  %850 = vmatprep.subr.mxu1 %v1507_v5 }
  0x7d   :  { %677 = vmatpush1.msra.mxu0 %v1664_v48  ;;  %852 = vmatpush1.msra.mxu1 %v1509_v9 }
  0x7e   :  { %680 = vmatprep.subr.mxu0 %v1678_v57  ;;  %854 = vmatprep.subr.mxu1 %v1511_v10 }
  0x7f   :  { %683 = vmatpush1.msra.mxu0 %v1690_v6  ;;  %856 = vmatpush1.msra.mxu1 %v1513_v11 }
  0x80   :  { %686 = vmatprep.subr.mxu0 %v1711_v54  ;;  %858 = vmatprep.subr.mxu1 %v1516_v15 }
  0x81   :  { %689 = vmatpush1.msra.mxu0 %v1724_v63  ;;  %860 = vmatpush1.msra.mxu1 %v1518_v16 }
  0x82   :  { %692 = vmatprep.subr.mxu0 %v1742_v55  ;;  %862 = vmatprep.subr.mxu1 %v1520_v17 }
  0x83   :  { %695 = vmatpush1.msra.mxu0 %v1755_v58  ;;  %864 = vmatpush1.msra.mxu1 %v1533_v22 }
  0x84   :  { %698 = vmatprep.subr.mxu0 %v1767_v60  ;;  %866 = vmatprep.subr.mxu1 %v3059_v24 }
  0x85   :  { %701 = vmatpush1.msra.mxu0 %v3060_v49  ;;  %868 = vmatpush1.msra.mxu1 %v3061_v62 }
  0x86   :  { %704 = vmatprep.subr.mxu0 %v3062_v33  ;;  %870 = vmatprep.subr.mxu1 %v3063_v51 }
  0x87   :  { %707 = vmatpush1.msra.mxu0 %v3064_v53  ;;  %872 = vmatpush1.msra.mxu1 %v3065_v19  ;;  %v3075_v53 = vld [vmem:[#allocation19_spill] sm:$0xff]  ;;  %v3076_v19 = vld [vmem:[#allocation45_spill] sm:$0xff] }
  0x88   :  { %710 = vmatprep.subr.mxu0 %v3066_v61  ;;  %874 = vmatprep.subr.mxu1 %v3067_v29  ;;  %v3077_v61 = vld [vmem:[#allocation20_spill] sm:$0xff]  ;;  %v3078_v29 = vld [vmem:[#allocation47_spill] sm:$0xff] }
  0x89   :  { %713 = vmatpush1.msra.mxu0 %v3068_v44  ;;  %876 = vmatpush1.msra.mxu1 %v3069_v52  ;;  %v3079_v44 = vld [vmem:[#allocation21_spill] sm:$0xff] }
  0x8a   :  { %716 = vmatprep.subr.mxu0 %v3070_v41  ;;  %878 = vmatprep.subr.mxu1 %v3071_v12  ;;  %v3080_v52 = vld [vmem:[#allocation49_spill] sm:$0xff]  ;;  %v3081_v41 = vld [vmem:[#allocation22_spill] sm:$0xff]  ;;  %v3082_v12 = vld [vmem:[#allocation51_spill] sm:$0xff] }
  0x8b   :  { %719 = vmatpush1.msra.mxu0 %v3072_v7  ;;  %880 = vmatpush1.msra.mxu1 %v3073_v39  ;;  %v3083_v7 = vld [vmem:[#allocation23_spill] sm:$0xff]  ;;  %v3084_v39 = vld [vmem:[#allocation53_spill] sm:$0xff] }
  0x8c   :  { %722 = vmatprep.subr.mxu0 %v3074_v28  ;;  %882 = vmatprep.subr.mxu1 %v3075_v53  ;;  %v3085_v28 = vld [vmem:[#allocation24_spill] sm:$0xff]  ;;  %v3086_v53 = vld [vmem:[#allocation55_spill] sm:$0xff] }
  0x8d   :  { %725 = vmatpush1.msra.mxu0 %v3076_v19  ;;  %884 = vmatpush1.msra.mxu1 %v3077_v61  ;;  %v3087_v19 = vld [vmem:[#allocation25_spill] sm:$0xff] }
  0x8e   :  { %728 = vmatprep.subr.mxu0 %v3078_v29  ;;  %886 = vmatprep.subr.mxu1 %v3079_v44  ;;  %v3088_v61 = vld [vmem:[#allocation57_spill] sm:$0xff]  ;;  %v3089_v29 = vld [vmem:[#allocation26_spill] sm:$0xff]  ;;  %v3090_v44 = vld [vmem:[#allocation59_spill] sm:$0xff] }
  0x8f   :  { %731 = vmatpush1.msra.mxu0 %v3080_v52  ;;  %888 = vmatpush1.msra.mxu1 %v3081_v41  ;;  %v3091_v52 = vld [vmem:[#allocation27_spill] sm:$0xff]  ;;  %v3092_v41 = vld [vmem:[#allocation61_spill] sm:$0xff] }
  0x90   :  { %734 = vmatprep.subr.mxu0 %v3082_v12  ;;  %890 = vmatprep.subr.mxu1 %v3083_v7  ;;  %v3093_v12 = vld [vmem:[#allocation28_spill] sm:$0xff]  ;;  %v3094_v7 = vld [vmem:[#allocation63_spill] sm:$0xff] }
  0x91   :  { %737 = vmatpush1.msra.mxu0 %v3084_v39  ;;  %892 = vmatpush1.msra.mxu1 %v3085_v28  ;;  %v3095_v39 = vld [vmem:[#allocation30_spill] sm:$0xff]  ;;  %v3096_v28 = vld [vmem:[#allocation65_spill] sm:$0xff] }
  0x92   :  { %740 = vmatprep.subr.mxu0 %v3086_v53  ;;  %894 = vmatprep.subr.mxu1 %v3087_v19  ;;  %v3097_v53 = vld [vmem:[#allocation32_spill] sm:$0xff]  ;;  %v3098_v19 = vld [vmem:[#allocation67_spill] sm:$0xff] }
  0x93   :  { %743 = vmatpush2.msra.mxu0 %v3088_v61  ;;  %896 = vmatpush1.msra.mxu1 %v3089_v29  ;;  %v3099_v61 = vld [vmem:[#allocation34_spill] sm:$0xff]  ;;  %v3100_v29 = vld [vmem:[#allocation69_spill] sm:$0xff] }
  0x94   :  { %746 = vmatprep.subr.mxu0 %v3090_v44  ;;  %898 = vmatprep.subr.mxu1 %v3091_v52  ;;  %v3101_v44 = vld [vmem:[#allocation36_spill] sm:$0xff]  ;;  %v3102_v52 = vld [vmem:[#allocation71_spill] sm:$0xff] }
  0x95   :  { %749 = vmatpush2.msra.mxu0 %v3092_v41  ;;  %900 = vmatpush1.msra.mxu1 %v3093_v12  ;;  %v3103_v41 = vld [vmem:[#allocation38_spill] sm:$0xff]  ;;  %v3104_v12 = vld [vmem:[#allocation73_spill] sm:$0xff] }
  0x96   :  { %752 = vmatprep.subr.mxu0 %v3094_v7  ;;  %902 = vmatprep.subr.mxu1 %v3095_v39  ;;  %v3105_v7 = vld [vmem:[#allocation40_spill] sm:$0xff]  ;;  %v3106_v39 = vld [vmem:[#allocation75_spill] sm:$0xff] }
  0x97   :  { %755 = vmatpush2.msra.mxu0 %v3096_v28  ;;  %904 = vmatpush1.msra.mxu1 %v3097_v53  ;;  %v3107_v28 = vld [vmem:[#allocation42_spill] sm:$0xff]  ;;  %v3108_v53 = vld [vmem:[#allocation77_spill] sm:$0xff] }
  0x98   :  { %758 = vmatprep.subr.mxu0 %v3098_v19  ;;  %906 = vmatprep.subr.mxu1 %v3099_v61  ;;  %v3109_v19 = vld [vmem:[#allocation44_spill] sm:$0xff]  ;;  %v3110_v61 = vld [vmem:[#allocation79_spill] sm:$0xff] }
  0x99   :  { %761 = vmatpush2.msra.mxu0 %v3100_v29  ;;  %908 = vmatpush1.msra.mxu1 %v3101_v44  ;;  %v3111_v29 = vld [vmem:[#allocation46_spill] sm:$0xff]  ;;  %v3112_v44 = vld [vmem:[#allocation81_spill] sm:$0xff] }
  0x9a   :  { %764 = vmatprep.subr.mxu0 %v3102_v52  ;;  %910 = vmatprep.subr.mxu1 %v3103_v41  ;;  %v3113_v52 = vld [vmem:[#allocation48_spill] sm:$0xff]  ;;  %v3114_v41 = vld [vmem:[#allocation83_spill] sm:$0xff] }
  0x9b   :  { %767 = vmatpush2.msra.mxu0 %v3104_v12  ;;  %912 = vmatpush2.msra.mxu1 %v3105_v7  ;;  %v3115_v12 = vld [vmem:[#allocation50_spill] sm:$0xff]  ;;  %v3116_v7 = vld [vmem:[#allocation85_spill] sm:$0xff] }
  0x9c   :  { %770 = vmatprep.subr.mxu0 %v3106_v39  ;;  %914 = vmatprep.subr.mxu1 %v3107_v28  ;;  %v3117_v39 = vld [vmem:[#allocation52_spill] sm:$0xff]  ;;  %v3118_v28 = vld [vmem:[#allocation86_spill] sm:$0xff] }
  0x9d   :  { %773 = vmatpush2.msra.mxu0 %v3108_v53  ;;  %916 = vmatpush2.msra.mxu1 %v3109_v19  ;;  %v3119_v53 = vld [vmem:[#allocation54_spill] sm:$0xff]  ;;  %v3120_v19 = vld [vmem:[#allocation87_spill] sm:$0xff] }
  0x9e   :  { %776 = vmatprep.subr.mxu0 %v3110_v61  ;;  %918 = vmatprep.subr.mxu1 %v3111_v29  ;;  %v3121_v61 = vld [vmem:[#allocation56_spill] sm:$0xff]  ;;  %v3122_v29 = vld [vmem:[#allocation89_spill] sm:$0xff] }
  0x9f   :  { %779 = vmatpush2.msra.mxu0 %v3112_v44  ;;  %920 = vmatpush2.msra.mxu1 %v3113_v52  ;;  %v3123_v44 = vld [vmem:[#allocation58_spill] sm:$0xff] }
  0xa0   :  { %782 = vmatprep.subr.mxu0 %v3114_v41  ;;  %922 = vmatprep.subr.mxu1 %v3115_v12  ;;  %v3124_v41 = vld [vmem:[#allocation60_spill] sm:$0xff]  ;;  %v3125_v12 = vld [vmem:[#allocation93_spill] sm:$0xff] }
  0xa1   :  { %785 = vmatpush2.msra.mxu0 %v3116_v7  ;;  %924 = vmatpush2.msra.mxu1 %v3117_v39  ;;  %v3126_v7 = vld [vmem:[#allocation62_spill] sm:$0xff] }
  0xa2   :  { %788 = vmatprep.subr.mxu0 %v3118_v28  ;;  %926 = vmatprep.subr.mxu1 %v3119_v53  ;;  %v3127_v28 = vld [vmem:[#allocation64_spill] sm:$0xff] }
  0xa3   :  { %791 = vmatpush2.msra.mxu0 %v3120_v19  ;;  %928 = vmatpush2.msra.mxu1 %v3121_v61  ;;  %v3128_v19 = vld [vmem:[#allocation66_spill] sm:$0xff] }
  0xa4   :  { %794 = vmatprep.subr.mxu0 %v3122_v29  ;;  %930 = vmatprep.subr.mxu1 %v3123_v44  ;;  %v3129_v29 = vld [vmem:[#allocation68_spill] sm:$0xff] }
  0xa5   :  { %797 = vmatpush2.msra.mxu0 %v2230_v50  ;;  %932 = vmatpush2.msra.mxu1 %v3124_v41  ;;  %v3130_v50 = vld [vmem:[#allocation70_spill] sm:$0xff] }
  0xa6   :  { %800 = vmatprep.subr.mxu0 %v3125_v12  ;;  %934 = vmatprep.subr.mxu1 %v3126_v7  ;;  %v3131_v12 = vld [vmem:[#allocation72_spill] sm:$0xff] }
  0xa7   :  { %803 = vmatpush2.msra.mxu0 %v2256_v36  ;;  %936 = vmatpush2.msra.mxu1 %v3127_v28  ;;  %v3132_v36 = vld [vmem:[#allocation74_spill] sm:$0xff] }
  0xa8   :  { %806 = vmatprep.subr.mxu0 %v2274_v46  ;;  %938 = vmatprep.subr.mxu1 %v3128_v19  ;;  %v3133_v46 = vld [vmem:[#allocation76_spill] sm:$0xff] }
  0xa9   :  { %809 = vmatpush2.msra.mxu0 %v2285_v47  ;;  %940 = vmatpush2.msra.mxu1 %v3129_v29  ;;  %v3134_v47 = vld [vmem:[#allocation78_spill] sm:$0xff] }
  0xaa   :  { %812 = vmatprep.subr.mxu0 %v2297_v20  ;;  %942 = vmatprep.subr.mxu1 %v3130_v50  ;;  %v3135_v20 = vld [vmem:[#allocation80_spill] sm:$0xff] }
  0xab   :  { %815 = vmatpush2.msra.mxu0 %v2310_v27  ;;  %944 = vmatpush2.msra.mxu1 %v3131_v12  ;;  %v3136_v27 = vld [vmem:[#allocation82_spill] sm:$0xff] }
  0xac   :  { %818 = vmatprep.subr.mxu0 %v2321_v30  ;;  %946 = vmatprep.subr.mxu1 %v3132_v36  ;;  %v3137_v30 = vld [vmem:[#allocation84_spill] sm:$0xff] }
  0xad   :  { %821 = vmatpush2.msra.mxu0 %v2328_v13  ;;  %948 = vmatpush2.msra.mxu1 %v3133_v46 }
  0xae   :  { %824 = vmatprep.subr.mxu0 %v2344_v1  ;;  %950 = vmatprep.subr.mxu1 %v3134_v47  ;;  %v3138_v1 = vand.u32 4294901760, %v1523_v18  ;;  %v3145_v18 = vand.u32 4294901760, %v1565_v35  ;;  %v3150_v35 = vand.u32 4294901760, %v2317_v32 }
  0xaf   :  { %827 = vmatpush2.msra.mxu0 %v2354_v26  ;;  %952 = vmatpush2.msra.mxu1 %v3135_v20  ;;  %v3139_v26 = vand.u32 4294901760, %v1536_v23  ;;  %v3140_v20 = vld [vmem:[#allocation88_spill] sm:$0xff]  ;;  %v3146_v23 = vand.u32 4294901760, %v1578_v40  ;;  %v3152_v40 = vand.u32 4294901760, %v1641_v8 }
  0xb0   :  { %830 = vmatprep.subr.mxu0 %v2363_v34  ;;  %954 = vmatprep.subr.mxu1 %v3136_v27  ;;  %v3141_v27 = vand.u32 4294901760, %v1542_v25  ;;  %v3144_v34 = vld [vmem:[#allocation92_spill] sm:$0xff]  ;;  %v3147_v25 = vand.u32 4294901760, %v1592_v45  ;;  %v3153_v45 = vand.u32 4294901760, %v1652_v42  ;;  %v3166_v42 = vld [vmem:[#allocation14_spill] sm:$0xff] }
  0xb1   :  { %833 = vmatpush2.msra.mxu0 %v2370_v56  ;;  %956 = vmatpush2.msra.mxu1 %v3137_v30  ;;  %v3142_v56 = vld [vmem:[#allocation90_spill] sm:$0xff]  ;;  %v3143_v30 = vand.u32 4294901760, %v1556_v31  ;;  %v3148_v31 = vand.u32 4294901760, %v2305_v21  ;;  %v3176_v21 = vld [vmem:[#allocation41_spill] sm:$0xff] }
  0xb2   :  { %839 = vmatmul.mubr.f32.vlgmr.msra.gmra.mxu0 %v2317_v32  ;;  %958 = vmatprep.subr.mxu1 %v2186_v43  ;;  %v3177_v32 = vand.u32 4294901760, %v3176_v21 }
  0xb3   :  { %989 = vmatprep.subr.mxu0 %v3138_v1  ;;  %960 = vmatpush2.msra.mxu1 %v2197_v37  ;;  %v3179_v1 = vld [vmem:[#allocation43_spill] sm:$0xff] }
  0xb4   :  { %993 = vmatpush1.msra.mxu0 %v3139_v26  ;;  %962 = vmatprep.subr.mxu1 %v3140_v20  ;;  %v3149_v26 = vand.u32 4294901760, %v1618_v59  ;;  %v3154_v59 = vand.u32 4294901760, %v1664_v48  ;;  %v3169_v48 = vld [vmem:[#allocation15_spill] sm:$0xff] }
  0xb5   :  { %997 = vmatprep.subr.mxu0 %v3141_v27  ;;  %964 = vmatpush2.msra.mxu1 %v3142_v56  ;;  %v3151_v27 = vand.u32 4294901760, %v1630_v0  ;;  %v3155_v0 = vand.u32 4294901760, %v1678_v57 }
  0xb6   :  { %1001 = vmatpush1.msra.mxu0 %v3143_v30  ;;  %966 = vmatprep.subr.mxu1 %v3144_v34  ;;  %v3178_v30 = vld [vmem:[#allocation18_spill] sm:$0xff] }
  0xb7   :  { %1005 = vmatprep.subr.mxu0 %v3145_v18  ;;  %968 = vmatpush2.msra.mxu1 %v2252_v14  ;;  %v3185_v18 = vld [vmem:[#allocation47_spill] sm:$0xff] }
  0xb8   :  { %1009 = vmatpush1.msra.mxu0 %v3146_v23  ;;  %970 = vmatprep.subr.mxu1 %v2265_v2  ;;  %v3186_v23 = vand.u32 4294901760, %v3185_v18 }
  0xb9   :  { %1013 = vmatprep.subr.mxu0 %v3147_v25  ;;  %972 = vmatpush2.msra.mxu1 %v2281_v38  ;;  %v3187_v25 = vld [vmem:[#allocation21_spill] sm:$0xff] }
  0xba   :  { %976 = vmatprep.mubr.f32.mxu1 %v3148_v31  ;;  %1017 = vmatpush1.msra.mxu0 %v3149_v26  ;;  %v3188_v31 = vld [vmem:[#allocation49_spill] sm:$0xff] }
  0xbb   :  { %980 = vmatmul.mubr.f32.vlgmr.msra.gmra.mxu1 %v3150_v35  ;;  %1021 = vmatprep.subr.mxu0 %v3151_v27  ;;  %v3189_v26 = vand.u32 4294901760, %v3188_v31  ;;  %v3190_v35 = vld [vmem:[#allocation22_spill] sm:$0xff]  ;;  %v3191_v27 = vld [vmem:[#allocation51_spill] sm:$0xff] }
  0xbc   :  { %1252 = vmatprep.subr.mxu1 %v1503_v3  ;;  %1025 = vmatpush1.msra.mxu0 %v3152_v40  ;;  %v3156_v3 = vand.u32 4294901760, %v1690_v6  ;;  %v3173_v6 = vld [vmem:[#allocation39_spill] sm:$0xff]  ;;  %v3192_v40 = vand.u32 4294901760, %v3191_v27 }
  0xbd   :  { %1254 = vmatpush1.msra.mxu1 %v1505_v4  ;;  %1029 = vmatprep.subr.mxu0 %v3153_v45  ;;  %v3157_v4 = vand.u32 4294901760, %v1711_v54  ;;  %v3170_v54 = vld [vmem:[#allocation37_spill] sm:$0xff]  ;;  %v3193_v45 = vld [vmem:[#allocation23_spill] sm:$0xff] }
  0xbe   :  { %1256 = vmatprep.subr.mxu1 %v1507_v5  ;;  %1033 = vmatpush1.msra.mxu0 %v3154_v59  ;;  %v3158_v5 = vand.u32 4294901760, %v1724_v63  ;;  %v3171_v57 = vand.u32 4294901760, %v3170_v54  ;;  %v3172_v63 = vld [vmem:[#allocation16_spill] sm:$0xff]  ;;  %v3194_v59 = vld [vmem:[#allocation53_spill] sm:$0xff] }
  0xbf   :  { %1258 = vmatpush1.msra.mxu1 %v1509_v9  ;;  %1037 = vmatprep.subr.mxu0 %v3155_v0  ;;  %v3159_v9 = vand.u32 4294901760, %v1742_v55  ;;  %v3174_v55 = vand.u32 4294901760, %v3173_v6  ;;  %v3195_v0 = vand.u32 4294901760, %v3194_v59 }
  0xc0   :  { %1260 = vmatprep.subr.mxu1 %v1511_v10  ;;  %1041 = vmatpush1.msra.mxu0 %v3156_v3  ;;  %v3160_v10 = vand.u32 4294901760, %v1755_v58  ;;  %v3175_v58 = vld [vmem:[#allocation17_spill] sm:$0xff]  ;;  %v3196_v3 = vld [vmem:[#allocation24_spill] sm:$0xff] }
  0xc1   :  { %1262 = vmatpush1.msra.mxu1 %v1513_v11  ;;  %1045 = vmatprep.subr.mxu0 %v3157_v4  ;;  %v3161_v11 = vand.u32 4294901760, %v1767_v60  ;;  %v3197_v4 = vld [vmem:[#allocation55_spill] sm:$0xff] }
  0xc2   :  { %1264 = vmatprep.subr.mxu1 %v1516_v15  ;;  %1049 = vmatpush1.msra.mxu0 %v3158_v5  ;;  %v3162_v15 = vand.u32 4294901760, %v3060_v49  ;;  %v3181_v49 = vld [vmem:[#allocation19_spill] sm:$0xff]  ;;  %v3198_v5 = vand.u32 4294901760, %v3197_v4 }
  0xc3   :  { %1266 = vmatpush1.msra.mxu1 %v1518_v16  ;;  %1053 = vmatprep.subr.mxu0 %v3159_v9  ;;  %v3163_v16 = vand.u32 4294901760, %v3062_v33  ;;  %v3199_v9 = vld [vmem:[#allocation25_spill] sm:$0xff] }
  0xc4   :  { %1268 = vmatprep.subr.mxu1 %v1520_v17  ;;  %1057 = vmatpush1.msra.mxu0 %v3160_v10  ;;  %v3164_v17 = vld [vmem:[#allocation33_spill] sm:$0xff] }
  0xc5   :  { %1270 = vmatpush1.msra.mxu1 %v1533_v22  ;;  %1061 = vmatprep.subr.mxu0 %v3161_v11  ;;  %v3165_v8 = vand.u32 4294901760, %v3164_v17  ;;  %v3167_v22 = vld [vmem:[#allocation35_spill] sm:$0xff]  ;;  %v3200_v10 = vld [vmem:[#allocation57_spill] sm:$0xff] }
  0xc6   :  { %1272 = vmatprep.subr.mxu1 %v3059_v24  ;;  %1065 = vmatpush1.msra.mxu0 %v3162_v15  ;;  %v3168_v60 = vand.u32 4294901760, %v3167_v22  ;;  %v3180_v24 = vand.u32 4294901760, %v3179_v1  ;;  %v3201_v11 = vand.u32 4294901760, %v3200_v10  ;;  %v3202_v15 = vld [vmem:[#allocation26_spill] sm:$0xff] }
  0xc7   :  { %1274 = vmatpush1.msra.mxu1 %v3061_v62  ;;  %1069 = vmatprep.subr.mxu0 %v3163_v16  ;;  %v3182_v62 = vld [vmem:[#allocation45_spill] sm:$0xff]  ;;  %v3203_v16 = vld [vmem:[#allocation59_spill] sm:$0xff]  ;;  %v3240_v10 = vld [vmem:[#allocation50_spill] sm:$0xff] }
  0xc8   :  { %1276 = vmatprep.subr.mxu1 %v3063_v51  ;;  %1073 = vmatpush1.msra.mxu0 %v3165_v8  ;;  %v3183_v33 = vand.u32 4294901760, %v3182_v62  ;;  %v3184_v51 = vld [vmem:[#allocation20_spill] sm:$0xff]  ;;  %v3204_v17 = vand.u32 4294901760, %v3203_v16  ;;  %v3205_v8 = vld [vmem:[#allocation27_spill] sm:$0xff]  ;;  %v3243_v16 = vld [vmem:[#allocation86_spill] sm:$0xff] }
  0xc9   :  { %1278 = vmatpush1.msra.mxu1 %v3166_v42  ;;  %1077 = vmatprep.subr.mxu0 %v3168_v60  ;;  %v3206_v42 = vld [vmem:[#allocation61_spill] sm:$0xff]  ;;  %v3208_v60 = vld [vmem:[#allocation28_spill] sm:$0xff] }
  0xca   :  { %1280 = vmatprep.subr.mxu1 %v3169_v48  ;;  %1081 = vmatpush1.msra.mxu0 %v3171_v57  ;;  %v3207_v22 = vand.u32 4294901760, %v3206_v42  ;;  %v3209_v48 = vld [vmem:[#allocation63_spill] sm:$0xff]  ;;  %v3211_v57 = vld [vmem:[#allocation30_spill] sm:$0xff] }
  0xcb   :  { %1282 = vmatpush1.msra.mxu1 %v3172_v63  ;;  %1085 = vmatprep.subr.mxu0 %v3174_v55  ;;  %v3210_v54 = vand.u32 4294901760, %v3209_v48  ;;  %v3212_v63 = vld [vmem:[#allocation65_spill] sm:$0xff]  ;;  %v3214_v55 = vld [vmem:[#allocation32_spill] sm:$0xff] }
  0xcc   :  { %1284 = vmatprep.subr.mxu1 %v3175_v58  ;;  %1089 = vmatpush1.msra.mxu0 %v3177_v32  ;;  %v3213_v6 = vand.u32 4294901760, %v3212_v63  ;;  %v3215_v58 = vld [vmem:[#allocation67_spill] sm:$0xff]  ;;  %v3217_v32 = vld [vmem:[#allocation34_spill] sm:$0xff] }
  0xcd   :  { %1286 = vmatpush1.msra.mxu1 %v3178_v30  ;;  %1093 = vmatprep.subr.mxu0 %v3180_v24  ;;  %v3216_v21 = vand.u32 4294901760, %v3215_v58  ;;  %v3218_v30 = vld [vmem:[#allocation69_spill] sm:$0xff]  ;;  %v3220_v24 = vld [vmem:[#allocation36_spill] sm:$0xff] }
  0xce   :  { %1288 = vmatprep.subr.mxu1 %v3181_v49  ;;  %1097 = vmatpush1.msra.mxu0 %v3183_v33  ;;  %v3219_v1 = vand.u32 4294901760, %v3218_v30  ;;  %v3221_v49 = vld [vmem:[#allocation71_spill] sm:$0xff]  ;;  %v3223_v33 = vld [vmem:[#allocation38_spill] sm:$0xff] }
  0xcf   :  { %1290 = vmatpush1.msra.mxu1 %v3184_v51  ;;  %1101 = vmatprep.subr.mxu0 %v3186_v23  ;;  %v3222_v62 = vand.u32 4294901760, %v3221_v49  ;;  %v3224_v51 = vld [vmem:[#allocation73_spill] sm:$0xff]  ;;  %v3226_v23 = vld [vmem:[#allocation40_spill] sm:$0xff]  ;;  %v3273_v49 = vld [vmem:[#allocation82_spill] sm:$0xff] }
  0xd0   :  { %1292 = vmatprep.subr.mxu1 %v3187_v25  ;;  %1105 = vmatpush1.msra.mxu0 %v3189_v26  ;;  %v3225_v18 = vand.u32 4294901760, %v3224_v51  ;;  %v3227_v25 = vld [vmem:[#allocation75_spill] sm:$0xff]  ;;  %v3229_v26 = vld [vmem:[#allocation42_spill] sm:$0xff] }
  0xd1   :  { %1294 = vmatpush1.msra.mxu1 %v3190_v35  ;;  %1109 = vmatprep.subr.mxu0 %v3192_v40  ;;  %v3228_v31 = vand.u32 4294901760, %v3227_v25  ;;  %v3230_v35 = vld [vmem:[#allocation77_spill] sm:$0xff]  ;;  %v3232_v40 = vld [vmem:[#allocation44_spill] sm:$0xff] }
  0xd2   :  { %1296 = vmatprep.subr.mxu1 %v3193_v45  ;;  %1113 = vmatpush1.msra.mxu0 %v3195_v0  ;;  %v3231_v27 = vand.u32 4294901760, %v3230_v35  ;;  %v3233_v45 = vld [vmem:[#allocation79_spill] sm:$0xff]  ;;  %v3235_v0 = vld [vmem:[#allocation46_spill] sm:$0xff] }
  0xd3   :  { %1298 = vmatpush1.msra.mxu1 %v3196_v3  ;;  %1117 = vmatprep.subr.mxu0 %v3198_v5  ;;  %v3234_v59 = vand.u32 4294901760, %v3233_v45  ;;  %v3236_v3 = vld [vmem:[#allocation81_spill] sm:$0xff]  ;;  %v3238_v5 = vld [vmem:[#allocation83_spill] sm:$0xff] }
  0xd4   :  { %1300 = vmatprep.subr.mxu1 %v3199_v9  ;;  %1121 = vmatpush2.msra.mxu0 %v3201_v11  ;;  %v3237_v4 = vand.u32 4294901760, %v3236_v3  ;;  %v3239_v9 = vand.u32 4294901760, %v3238_v5  ;;  %v3241_v11 = vld [vmem:[#allocation85_spill] sm:$0xff] }
  0xd5   :  { %1302 = vmatpush1.msra.mxu1 %v3202_v15  ;;  %1125 = vmatprep.subr.mxu0 %v3204_v17  ;;  %v3242_v15 = vand.u32 4294901760, %v3241_v11  ;;  %v3244_v17 = vand.u32 4294901760, %v3243_v16 }
  0xd6   :  { %1304 = vmatprep.subr.mxu1 %v3205_v8  ;;  %1129 = vmatpush2.msra.mxu0 %v3207_v22  ;;  %v3245_v8 = vld [vmem:[#allocation87_spill] sm:$0xff] }
  0xd7   :  { %1306 = vmatpush1.msra.mxu1 %v3208_v60  ;;  %1133 = vmatprep.subr.mxu0 %v3210_v54  ;;  %v3246_v42 = vand.u32 4294901760, %v3245_v8  ;;  %v3249_v60 = vld [vmem:[#allocation91_spill] sm:$0xff] }
  0xd8   :  { %1308 = vmatprep.subr.mxu1 %v3211_v57  ;;  %1137 = vmatpush2.msra.mxu0 %v3213_v6  ;;  %v3250_v48 = vand.u32 4294901760, %v3249_v60 }
  0xd9   :  { %1310 = vmatpush1.msra.mxu1 %v3214_v55  ;;  %1141 = vmatprep.subr.mxu0 %v3216_v21 }
  0xda   :  { %1312 = vmatprep.subr.mxu1 %v3217_v32  ;;  %1145 = vmatpush2.msra.mxu0 %v3219_v1  ;;  %v3270_v1 = vld [vmem:[#allocation80_spill] sm:$0xff] }
  0xdb   :  { %1314 = vmatpush1.msra.mxu1 %v3220_v24  ;;  %1149 = vmatprep.subr.mxu0 %v3222_v62  ;;  %v3276_v62 = vld [vmem:[#allocation97_spill] sm:$0xff] }
  0xdc   :  { %1316 = vmatprep.subr.mxu1 %v3223_v33  ;;  %1153 = vmatpush2.msra.mxu0 %v3225_v18  ;;  %v3278_v33 = vld [vmem:[#allocation99_spill] sm:$0xff] }
  0xdd   :  { %1318 = vmatpush2.msra.mxu1 %v3226_v23  ;;  %1157 = vmatprep.subr.mxu0 %v3228_v31 }
  0xde   :  { %1320 = vmatprep.subr.mxu1 %v3229_v26  ;;  %1161 = vmatpush2.msra.mxu0 %v3231_v27 }
  0xdf   :  { %1322 = vmatpush2.msra.mxu1 %v3232_v40  ;;  %1165 = vmatprep.subr.mxu0 %v3234_v59 }
  0xe0   :  { %1324 = vmatprep.subr.mxu1 %v3235_v0  ;;  %1169 = vmatpush2.msra.mxu0 %v3237_v4 }
  0xe1   :  { %1326 = vmatpush2.msra.mxu1 %v3113_v52  ;;  %1173 = vmatprep.subr.mxu0 %v3239_v9  ;;  %v3247_v52 = vld [vmem:[#allocation89_spill] sm:$0xff] }
  0xe2   :  { %1328 = vmatprep.subr.mxu1 %v3240_v10  ;;  %1177 = vmatpush2.msra.mxu0 %v3242_v15  ;;  %v3248_v22 = vand.u32 4294901760, %v3247_v52 }
  0xe3   :  { %1330 = vmatpush2.msra.mxu1 %v3117_v39  ;;  %1181 = vmatprep.subr.mxu0 %v3244_v17  ;;  %v3251_v39 = vld [vmem:[#allocation93_spill] sm:$0xff] }
  0xe4   :  { %1332 = vmatprep.subr.mxu1 %v3119_v53  ;;  %1185 = vmatpush2.msra.mxu0 %v3246_v42  ;;  %v3252_v54 = vand.u32 4294901760, %v3251_v39  ;;  %v3253_v53 = vld [vmem:[#allocation94_spill] sm:$0xff] }
  0xe5   :  { %1334 = vmatpush2.msra.mxu1 %v3121_v61  ;;  %1189 = vmatprep.subr.mxu0 %v3248_v22  ;;  %v3254_v57 = vand.u32 4294901760, %v3253_v53  ;;  %v3255_v61 = vld [vmem:[#allocation95_spill] sm:$0xff] }
  0xe6   :  { %1336 = vmatprep.subr.mxu1 %v3123_v44  ;;  %1193 = vmatpush2.msra.mxu0 %v3250_v48  ;;  %v3256_v63 = vand.u32 4294901760, %v3255_v61  ;;  %v3257_v44 = vld [vmem:[#allocation96_spill] sm:$0xff] }
  0xe7   :  { %1338 = vmatpush2.msra.mxu1 %v3124_v41  ;;  %1197 = vmatprep.subr.mxu0 %v3252_v54  ;;  %v3258_v6 = vand.u32 4294901760, %v3257_v44  ;;  %v3259_v41 = vld [vmem:[#allocation98_spill] sm:$0xff] }
  0xe8   :  { %1340 = vmatprep.subr.mxu1 %v3126_v7  ;;  %1201 = vmatpush2.msra.mxu0 %v3254_v57  ;;  %v3260_v55 = vand.u32 4294901760, %v3259_v41  ;;  %v3261_v7 = vld [vmem:[#allocation100_spill] sm:$0xff] }
  0xe9   :  { %1342 = vmatpush2.msra.mxu1 %v3127_v28  ;;  %1205 = vmatprep.subr.mxu0 %v3256_v63  ;;  %v3262_v58 = vand.u32 4294901760, %v3261_v7  ;;  %v3263_v28 = vld [vmem:[#allocation101_spill] sm:$0xff] }
  0xea   :  { %1344 = vmatprep.subr.mxu1 %v3128_v19  ;;  %1209 = vmatpush2.msra.mxu0 %v3258_v6  ;;  %v3264_v21 = vand.u32 4294901760, %v3263_v28  ;;  %v3265_v19 = vand.u32 4294901760, %v2328_v13 }
  0xeb   :  { %1346 = vmatpush2.msra.mxu1 %v3129_v29  ;;  %1213 = vmatprep.subr.mxu0 %v3260_v55  ;;  %v3266_v29 = vld [vmem:[#allocation102_spill] sm:$0xff] }
  0xec   :  { %1348 = vmatprep.subr.mxu1 %v3130_v50  ;;  %1217 = vmatpush2.msra.mxu0 %v3262_v58  ;;  %v3267_v32 = vand.u32 4294901760, %v3266_v29  ;;  %v3268_v50 = vld [vmem:[#allocation103_spill] sm:$0xff] }
  0xed   :  { %1350 = vmatpush2.msra.mxu1 %v3131_v12  ;;  %1221 = vmatprep.subr.mxu0 %v3264_v21  ;;  %v3269_v30 = vand.u32 4294901760, %v3268_v50  ;;  %v3271_v12 = vld [vmem:[#allocation104_spill] sm:$0xff] }
  0xee   :  { %1352 = vmatprep.subr.mxu1 %v3132_v36  ;;  %1225 = vmatpush2.msra.mxu0 %v3265_v19  ;;  %v3272_v24 = vand.u32 4294901760, %v3271_v12  ;;  %v3274_v36 = vld [vmem:[#allocation105_spill] sm:$0xff] }
  0xef   :  { %1354 = vmatpush2.msra.mxu1 %v3133_v46  ;;  %1229 = vmatprep.subr.mxu0 %v3267_v32  ;;  %v3275_v13 = vand.u32 4294901760, %v3274_v36  ;;  %v3277_v46 = vld [vmem:[#allocation84_spill] sm:$0xff] }
  0xf0   :  { %1356 = vmatprep.subr.mxu1 %v3134_v47  ;;  %1233 = vmatpush2.msra.mxu0 %v3269_v30 }
  0xf1   :  { %1358 = vmatpush2.msra.mxu1 %v3270_v1  ;;  %1237 = vmatprep.subr.mxu0 %v3272_v24 }
  0xf2   :  { %1360 = vmatprep.subr.mxu1 %v3273_v49  ;;  %1241 = vmatpush2.msra.mxu0 %v3275_v13 }
  0xf3   :  { %1243 = vmatprep.mubr.f32.mxu0 %v3276_v62  ;;  %1362 = vmatpush2.msra.mxu1 %v3277_v46 }
  0xf4   :  { %1245 = vmatmul.mubr.f32.vlgmr.msra.gmra.mxu0 %v3278_v33  ;;  %1364 = vmatprep.subr.mxu1 %v2186_v43 }
  0xf5   :  { %1380 = vmatprep.mubr.f32.mxu1 %v3276_v62  ;;  %1366 = vmatpush2.msra.mxu1 %v2197_v37 }
  0xf6   :  { %1368 = vmatprep.subr.mxu1 %v3140_v20 }
  0xf7   :  { %1370 = vmatpush2.msra.mxu1 %v3142_v56 }
  0xf8   :  { %1372 = vmatprep.subr.mxu1 %v3144_v34 }
  0xf9   :  { %1374 = vmatpush2.msra.mxu1 %v2252_v14 }
  0xfa   :  { %1376 = vmatprep.subr.mxu1 %v2265_v2 }
  0xfb   :  { %1378 = vmatpush2.msra.mxu1 %v2281_v38 }
  0xfc   :  { %1382 = vmatmul.mubr.f32.vlgmr.msra.gmra.mxu1 %v3278_v33 }
 0x132   :  { %v244_v47 = vpop.f32.mrf.mxu0 }
 0x134   :  { %v246_v43 = vpop.f32.mrf.mxu0 }
 0x139   :  { %v637_v51 = vpop.f32.mrf.mxu1 }
 0x13a   :  { %v638_v20 = vadd.f32 %v637_v51, %v244_v47 }
 0x13b   :  { %v639_v23 = vpop.f32.mrf.mxu1 }
 0x13c   :  { %v640_v56 = vadd.f32 %v639_v23, %v246_v43 }
 0x172   :  { %v840_v18 = vpop.f32.mrf.mxu0 }
 0x173   :  { %v841_v26 = vadd.f32 %v840_v18, %v638_v20 }
 0x174   :  { %v842_v37 = vpop.f32.mrf.mxu0 }
 0x175   :  { %v843_v35 = vadd.f32 %v842_v37, %v640_v56 }
 0x17b   :  { %v981_v25 = vpop.f32.mrf.mxu1 }
 0x17c   :  { %v982_v14 = vadd.f32 %v981_v25, %v841_v26 }
 0x17d   :  { %v983_v34 = vpop.f32.mrf.mxu1 }
 0x17e   :  { %v984_v2 = vadd.f32 %v983_v34, %v843_v35 }
 0x1b4   :  { %v1246_v31 = vpop.f32.mrf.mxu0 }
 0x1b5   :  { %v1247_v40 = vadd.f32 %v1246_v31, %v982_v14 }
 0x1b6   :  { %v1248_v27 = vpop.f32.mrf.mxu0 }
 0x1b7   :  { %v1249_v45 = vadd.f32 %v1248_v27, %v984_v2 }
 0x1bc   :  { %v1383_v38 = vpop.f32.mrf.mxu1 }
 0x1bd   :  { %v1384_v59 = vadd.f32 %v1383_v38, %v1247_v40 }
 0x1be   :  { %v1385_v0 = vpop.f32.mrf.mxu1 }
 0x1bf   :  { %1388 = vst [vmem:[#allocation7] sm:$0xff] %v1384_v59  ;;  %v1386_v3 = vadd.f32 %v1385_v0, %v1249_v45 }
 0x1c1   :  { %1389 = vst [vmem:[#allocation7 + $0x8] sm:$0xff] %v1386_v3 }
 0x1c2   :  { %1462 = shalt.err (!%p1459_p0)
}
 0x1c3   :  { %1399 = dma.vmem_to_hbm [thread:$0]  %s1397_s1, 256, %s2718_s2, [#allocation4]  }
 0x1c4   :  { %1475 = dma.done.wait [#allocation4], 256  }
 0x1c5   :  { %1476 = vsyncadd [#allocation4], 4294967040 }
 0x1c6   :  { %1403 = vsyncpa [#allocation3], 1 }
 0x1c7   :  { %1404 = vsyncpa [#allocation6], 1 }
 0x1c8   :  { %1405 = vsyncpa [#allocation4], 1 }

</bundles_post_ra>
